<compile_context>
chip_gen: v6e
topology: v6e:2x2x1
jax: 0.10.0
libtpu: 0.0.40
codegen_flags: <defaults>
</compile_context>

<pallas_src>
import jax
import jax.numpy as jnp
from jax import lax
from jax.experimental import pallas as pl
from jax.experimental.pallas import tpu as pltpu

ZETA = 128          # hidden width
LANE = 128          # TPU lane width; tiles are multiples of this
MAX_TILE_N = 4096   # cap on samples (lanes) per grid step


def _mlp_kernel(x_ref, w1_ref, b1_ref, w2_ref, b2_ref, w3_ref, b3_ref, o_ref):
    # x_ref : (2, tile_n)            rows = [t, x], samples on the lane axis
    # w1    : (ZETA, 2)    b1: (ZETA, 1)
    # w2    : (ZETA, ZETA) b2: (ZETA, 1)
    # w3    : (1, ZETA)    b3: (1,) scalar in SMEM
    # o_ref : (1, tile_n)            lane-dense output block
    t_row = x_ref[0:1, :]            # (1, tile_n)
    s_row = x_ref[1:2, :]            # (1, tile_n)
    w1 = w1_ref[...]                 # (ZETA, 2)

    # Layer 1: K=2 contraction as two VPU broadcast-FMAs (avoids a padded MXU push).
    h = jnp.tanh(w1[:, 0:1] * t_row + w1[:, 1:2] * s_row + b1_ref[...])  # (ZETA, tile_n)

    # Layer 2: 128x128 MXU matmul, f32 accumulation, pinned precision.
    h = jnp.tanh(
        jnp.dot(w2_ref[...], h,
                preferred_element_type=jnp.float32,
                precision=lax.Precision.HIGHEST)
        + b2_ref[...]
    )                                                                     # (ZETA, tile_n)

    # Layer 3: (1,128) @ (128, tile_n) -> (1, tile_n), plus scalar bias from SMEM.
    o_ref[...] = (
        jnp.dot(w3_ref[...], h,
                preferred_element_type=jnp.float32,
                precision=lax.Precision.HIGHEST)
        + b3_ref[0]
    )


def _choose_tile(n):
    """Pick (tile_n, n_pad) for n samples.

    - Pad only to a multiple of 128 (one vreg of lanes).
    - Prefer >= 2 grid steps so v7x's two TensorCores both get work.
    - Cap the tile at MAX_TILE_N lanes (activations ~2 MiB f32 at the cap, far
      under every generation's VMEM limit) so per-step overhead is amortized
      for large PINN batches while padding waste stays small.
    """
    n128 = pl.cdiv(n, LANE) * LANE
    if n128 <= LANE:
        return LANE, LANE
    half = pl.cdiv(pl.cdiv(n128, 2), LANE) * LANE   # ~half the batch, lane-aligned
    tile_n = min(MAX_TILE_N, half)
    n_pad = pl.cdiv(n128, tile_n) * tile_n
    return tile_n, n_pad


def _mlp_pallas(X, params, tile_n):
    """X: (2, N) float32 with N a multiple of tile_n. Returns (1, N) float32."""
    w1, b1, w2, b2, w3, b3 = params
    N = X.shape[1]
    grid = (N // tile_n,)

    full = lambda i: (0, 0)  # whole-array blocks for weights/biases (DMA'd once)

    return pl.pallas_call(
        _mlp_kernel,
        out_shape=jax.ShapeDtypeStruct((1, N), jnp.float32),
        grid_spec=pltpu.PrefetchScalarGridSpec(
            num_scalar_prefetch=0,
            grid=grid,
            in_specs=[
                pl.BlockSpec((2, tile_n), lambda i: (0, i)),   # X block, lane-dense
                pl.BlockSpec((ZETA, 2), full),                 # w1
                pl.BlockSpec((ZETA, 1), full),                 # b1
                pl.BlockSpec((ZETA, ZETA), full),              # w2
                pl.BlockSpec((ZETA, 1), full),                 # b2
                pl.BlockSpec((1, ZETA), full),                 # w3
                pl.BlockSpec(memory_space=pltpu.MemorySpace.SMEM),  # b3 scalar
            ],
            out_specs=pl.BlockSpec((1, tile_n), lambda i: (0, i)),
        ),
        compiler_params=pltpu.CompilerParams(
            dimension_semantics=("parallel",),
        ),
    )(X, w1, b1, w2, b2, w3, b3)


def init_params(key):
    """Deterministic init mirroring nn.Linear (uniform +/- 1/sqrt(fan_in)).

    Weights are stored PyTorch-style (out_features, in_features); biases as
    column vectors (out_features, 1), except b3 which is a (1,) scalar array.
    """
    ks = jax.random.split(key, 6)

    def linear(kw, kb, fan_in, fan_out):
        bound = 1.0 / jnp.sqrt(jnp.float32(fan_in))
        w = jax.random.uniform(kw, (fan_out, fan_in), jnp.float32, -bound, bound)
        b = jax.random.uniform(kb, (fan_out, 1), jnp.float32, -bound, bound)
        return w, b

    w1, b1 = linear(ks[0], ks[1], 2, ZETA)
    w2, b2 = linear(ks[2], ks[3], ZETA, ZETA)
    w3, b3 = linear(ks[4], ks[5], ZETA, 1)
    return (w1, b1, w2, b2, w3, b3.reshape((1,)))


def nn_forward(t, x, params):
    """Matches NN.forward: t, x of shape (1, n); returns (1, n)."""
    t = t.astype(jnp.float32)
    x = x.astype(jnp.float32)
    n = t.shape[1]
    X = jnp.concatenate((t, x), axis=0)  # (2, n) -- no transposes needed

    tile_n, n_pad = _choose_tile(n)
    if n_pad != n:
        X = jnp.pad(X, ((0, 0), (0, n_pad - n)))

    out = _mlp_pallas(X, params, tile_n)  # (1, n_pad)
    return out[:, :n]                     # (1, n)


def nn_forward_ref(t, x, params):
    """Pure-JAX reference for correctness checking (column-major math)."""
    w1, b1, w2, b2, w3, b3 = params
    X = jnp.concatenate((t.astype(jnp.float32), x.astype(jnp.float32)), axis=0)
    h = jnp.tanh(w1 @ X + b1)
    h = jnp.tanh(w2 @ h + b2)
    return w3 @ h + b3[0]  # (1, n)


if __name__ == "__main__":
    key = jax.random.PRNGKey(0)
    k_p, k_t, k_x = jax.random.split(key, 3)

    params = init_params(k_p)

    n = 256  # number of collocation points
    t_in = jax.random.uniform(k_t, (1, n), jnp.float32)
    x_in = jax.random.uniform(k_x, (1, n), jnp.float32)

    out = nn_forward(t_in, x_in, params)
    out = jax.block_until_ready(out)

    ref = nn_forward_ref(t_in, x_in, params)
    assert out.shape == (1, n), out.shape
    assert jnp.allclose(out, ref, atol=1e-5, rtol=1e-5), float(
        jnp.max(jnp.abs(out - ref))
    )

    print("KERNEL_OK")
</pallas_src>

<mosaic_0001>
module attributes {stable_mosaic.version = 11 : i64} {
  func.func @_mlp_kernel(%arg0: i32, %arg1: memref<2x128xf32, #tpu.memory_space<vmem>>, %arg2: memref<128x2xf32, #tpu.memory_space<vmem>>, %arg3: memref<128x1xf32, #tpu.memory_space<vmem>>, %arg4: memref<128x128xf32, #tpu.memory_space<vmem>>, %arg5: memref<128x1xf32, #tpu.memory_space<vmem>>, %arg6: memref<1x128xf32, #tpu.memory_space<vmem>>, %arg7: memref<1xf32, #tpu.memory_space<smem>>, %arg8: memref<1x128xf32, #tpu.memory_space<vmem>>) attributes {dimension_semantics = [#tpu.dimension_semantics<parallel>], iteration_bounds = array<i64: 2>, scalar_prefetch = 0 : i64, scratch_operands = 0 : i64, tpu.core_type = #tpu.core_type<tc>, window_params = [{transform_indices = @transform_0, window_bounds = array<i64: 2, 128>}, {pipeline_mode = #tpu.pipeline_mode<synchronous>, transform_indices = @transform_1, window_bounds = array<i64: 128, 2>}, {pipeline_mode = #tpu.pipeline_mode<synchronous>, transform_indices = @transform_2, window_bounds = array<i64: 128, 1>}, {pipeline_mode = #tpu.pipeline_mode<synchronous>, transform_indices = @transform_3, window_bounds = array<i64: 128, 128>}, {pipeline_mode = #tpu.pipeline_mode<synchronous>, transform_indices = @transform_4, window_bounds = array<i64: 128, 1>}, {pipeline_mode = #tpu.pipeline_mode<synchronous>, transform_indices = @transform_5, window_bounds = array<i64: 1, 128>}, {transform_indices = @transform_6, window_bounds = array<i64: 1>}, {transform_indices = @transform_7, window_bounds = array<i64: 1, 128>}]} {
    %c0 = arith.constant 0 : index
    %c0_0 = arith.constant 0 : index
    %0 = vector.load %arg1[%c0, %c0_0] : memref<2x128xf32, #tpu.memory_space<vmem>>, vector<1x128xf32>
    %c1 = arith.constant 1 : index
    %c0_1 = arith.constant 0 : index
    %1 = vector.load %arg1[%c1, %c0_1] : memref<2x128xf32, #tpu.memory_space<vmem>>, vector<1x128xf32>
    %c0_2 = arith.constant 0 : index
    %c0_3 = arith.constant 0 : index
    %2 = vector.load %arg2[%c0_2, %c0_3] : memref<128x2xf32, #tpu.memory_space<vmem>>, vector<128x2xf32>
    %3 = vector.extract_strided_slice %2 {offsets = [0, 0], sizes = [128, 1], strides = [1, 1]} : vector<128x2xf32> to vector<128x1xf32>
    %4 = vector.broadcast %3 : vector<128x1xf32> to vector<128x128xf32>
    %5 = vector.broadcast %0 : vector<1x128xf32> to vector<128x128xf32>
    %6 = arith.mulf %4, %5 : vector<128x128xf32>
    %7 = vector.extract_strided_slice %2 {offsets = [0, 1], sizes = [128, 1], strides = [1, 1]} : vector<128x2xf32> to vector<128x1xf32>
    %8 = vector.broadcast %7 : vector<128x1xf32> to vector<128x128xf32>
    %9 = vector.broadcast %1 : vector<1x128xf32> to vector<128x128xf32>
    %10 = arith.mulf %8, %9 : vector<128x128xf32>
    %11 = arith.addf %6, %10 : vector<128x128xf32>
    %c0_4 = arith.constant 0 : index
    %c0_5 = arith.constant 0 : index
    %12 = vector.load %arg3[%c0_4, %c0_5] : memref<128x1xf32, #tpu.memory_space<vmem>>, vector<128x1xf32>
    %13 = vector.broadcast %12 : vector<128x1xf32> to vector<128x128xf32>
    %14 = arith.addf %11, %13 : vector<128x128xf32>
    %15 = math.tanh %14 : vector<128x128xf32>
    %c0_6 = arith.constant 0 : index
    %c0_7 = arith.constant 0 : index
    %16 = vector.load %arg4[%c0_6, %c0_7] : memref<128x128xf32, #tpu.memory_space<vmem>>, vector<128x128xf32>
    %cst = arith.constant dense<0.000000e+00> : vector<128x128xf32>
    %17 = tpu.matmul %16, %15, %cst {dimension_numbers = #tpu.dot_dimension_numbers<[1], [0], [0], [1], [0, 0, 1, 1], [], []>, precision = #tpu.contract_precision<fp32>} : vector<128x128xf32>, vector<128x128xf32>, vector<128x128xf32> -> vector<128x128xf32>
    %c0_8 = arith.constant 0 : index
    %c0_9 = arith.constant 0 : index
    %18 = vector.load %arg5[%c0_8, %c0_9] : memref<128x1xf32, #tpu.memory_space<vmem>>, vector<128x1xf32>
    %19 = vector.broadcast %18 : vector<128x1xf32> to vector<128x128xf32>
    %20 = arith.addf %17, %19 : vector<128x128xf32>
    %21 = math.tanh %20 : vector<128x128xf32>
    %c0_10 = arith.constant 0 : index
    %c0_11 = arith.constant 0 : index
    %22 = vector.load %arg6[%c0_10, %c0_11] : memref<1x128xf32, #tpu.memory_space<vmem>>, vector<1x128xf32>
    %cst_12 = arith.constant dense<0.000000e+00> : vector<1x128xf32>
    %23 = tpu.matmul %22, %21, %cst_12 {dimension_numbers = #tpu.dot_dimension_numbers<[1], [0], [0], [1], [0, 0, 1, 1], [], []>, precision = #tpu.contract_precision<fp32>} : vector<1x128xf32>, vector<128x128xf32>, vector<1x128xf32> -> vector<1x128xf32>
    %c0_13 = arith.constant 0 : index
    %24 = memref.load %arg7[%c0_13] : memref<1xf32, #tpu.memory_space<smem>>
    %25 = vector.broadcast %24 : f32 to vector<1x128xf32>
    %26 = arith.addf %23, %25 : vector<1x128xf32>
    %c0_14 = arith.constant 0 : index
    %c0_15 = arith.constant 0 : index
    %27 = vector.load %arg8[%c0_14, %c0_15] : memref<1x128xf32, #tpu.memory_space<vmem>>, vector<1x128xf32>
    tpu.vector_store %arg8[%c0_14, %c0_15], %26 {strides = array<i32>} : memref<1x128xf32, #tpu.memory_space<vmem>>, vector<1x128xf32>,
    return
  }
  func.func @transform_0(%arg0: i32) -> (i32, i32) {
    %c0_i32 = arith.constant 0 : i32
    %c0_i32_0 = arith.constant 0 : i32
    return %c0_i32, %arg0 : i32, i32
  }
  func.func @transform_1(%arg0: i32) -> (i32, i32) {
    %c0_i32 = arith.constant 0 : i32
    %c0_i32_0 = arith.constant 0 : i32
    %c0_i32_1 = arith.constant 0 : i32
    return %c0_i32, %c0_i32_0 : i32, i32
  }
  func.func @transform_2(%arg0: i32) -> (i32, i32) {
    %c0_i32 = arith.constant 0 : i32
    %c0_i32_0 = arith.constant 0 : i32
    %c0_i32_1 = arith.constant 0 : i32
    return %c0_i32, %c0_i32_0 : i32, i32
  }
  func.func @transform_3(%arg0: i32) -> (i32, i32) {
    %c0_i32 = arith.constant 0 : i32
    %c0_i32_0 = arith.constant 0 : i32
    %c0_i32_1 = arith.constant 0 : i32
    return %c0_i32, %c0_i32_0 : i32, i32
  }
  func.func @transform_4(%arg0: i32) -> (i32, i32) {
    %c0_i32 = arith.constant 0 : i32
    %c0_i32_0 = arith.constant 0 : i32
    %c0_i32_1 = arith.constant 0 : i32
    return %c0_i32, %c0_i32_0 : i32, i32
  }
  func.func @transform_5(%arg0: i32) -> (i32, i32) {
    %c0_i32 = arith.constant 0 : i32
    %c0_i32_0 = arith.constant 0 : i32
    %c0_i32_1 = arith.constant 0 : i32
    return %c0_i32, %c0_i32_0 : i32, i32
  }
  func.func @transform_6(%arg0: i32) -> i32 {
    %c0_i32 = arith.constant 0 : i32
    %c0_i32_0 = arith.constant 0 : i32
    return %c0_i32 : i32
  }
  func.func @transform_7(%arg0: i32) -> (i32, i32) {
    %c0_i32 = arith.constant 0 : i32
    %c0_i32_0 = arith.constant 0 : i32
    return %c0_i32, %arg0 : i32, i32
  }
}

</mosaic_0001>

<bundles_post_ra>
// kernel: tpu_custom_call.1
= control target key start
LH: loop header
LB: loop body
LE: loop exit
PB: predicated region body
PF: predicated region fallthrough
CT: control target
= control target key end

     0   :  { %s5260_s0 = inlined_call_operand.vmem [shape: f32[2,256], index: 0, kind: input, shape index: {}]   ;;  %s5261_s1 = inlined_call_operand.vmem [shape: f32[128,2], index: 1, kind: input, shape index: {}]   ;;  %s5262_s2 = inlined_call_operand.vmem [shape: f32[128,1], index: 2, kind: input, shape index: {}]   ;;  %s5263_s3 = inlined_call_operand.vmem [shape: f32[128,128], index: 3, kind: input, shape index: {}]   ;;  %s5264_s4 = inlined_call_operand.vmem [shape: f32[128,1], index: 4, kind: input, shape index: {}]   ;;  %s5265_s5 = inlined_call_operand.vmem [shape: f32[1,128], index: 5, kind: input, shape index: {}]   ;;  %s5266_s6 = inlined_call_operand.<no memory space> [shape: f32[1], index: 6, kind: input, shape index: {}]   ;;  %s5267_s7 = inlined_call_operand.hbm [shape: f32[1,256], index: 7, kind: output, shape index: {}]  }
   0x1   :  { %12 = sst [smem:[#allocation2]] %s5266_s6 }
   0x2   :  { %13 = vsyncpa [#allocation4], 0 }
   0x3   :  { %15 = vsyncpa [#allocation4 + $0x1], 0  ;;  %s3833_s26 = smov 0   ;;  %s3835_s27 = smov 0  }
   0x4   :  { %s3837_s28 = smov 0   ;;  %s3839_s29 = smov 0  }
   0x5 LB: > { %s3854_s6 = sadd.s32 4294967295, %s3783_s29   ;;  %s2747_s30 = sadd.s32 4294967294, %s3783_s29   ;;  %s3783_s29 = sphi %s3839_s29, %s5388_s29   ;;  %s3779_s28 = sphi %s3837_s28, %s5387_s28   ;;  %s3775_s27 = sphi %s3835_s27, %s5386_s27   ;;  %s3771_s26 = sphi %s3833_s26, %s5385_s26  }
   0x6   : > { %s3858_s8 = sadd.s32 1, %s3783_s29   ;;  %s180_s9 = sadd.s32 1, %s3779_s28 }
   0x7   : > { %s177_s10 = ssub.s32 %s3783_s29, %s3858_s8  ;;  %p190_p0 = scmp.ne.s32.totalorder %s3779_s28, %s3775_s27 }
   0x8   : > { %p178_p1 = scmp.eq.s32.totalorder %s177_s10, 0  ;;  %p191_p2 = scmp.eq.s32.totalorder %s3854_s6, 1 }
   0x9   : > { %p196_p3 = scmp.ne.s32.totalorder %s3775_s27, %s3771_s26  ;;  %p197_p4 = scmp.eq.s32.totalorder %s2747_s30, 1 }
   0xa   : > { %s3869_s11 = scalar_select %p178_p1, %s3779_s28, %s180_s9  }
   0xb   : > { %p3871_p5 = por %p191_p2, %p190_p0  ;;  %p3875_p6 = por %p197_p4, %p196_p3 }
   0xc   : > { %p2750_p7 = scmp.ge.s32.totalorder %s3783_s29, 1  ;;  %p240_p8 = scmp.lt.s32.totalorder %s3783_s29, 3 }
   0xe   : > { %p241_p9 = pnand %p2750_p7, %p240_p8 }
  0x10   : > { %244 = sbr.rel (%p241_p9) target bundleno = 947 (0x3b3), region = 48 }
  0x15   : > { %v291_v0 = vld [vmem:[%s5261_s1 + $0x78] sm:$0xff]  ;;  %v290_v1 = vld [vmem:[%s5261_s1 + $0x70] sm:$0xff]  ;;  %v3785_v2 = vmov 1   ;;  %v3786_v3 = vmov 0   ;;  %v289_v4 = vld [vmem:[%s5261_s1 + $0x68] sm:$0xff]  ;;  %p270_p10 = scmp.lt.s32.totalorder %s3854_s6, 1 }
  0x16   : > { %3640 = vset.pattern.permute.xlu0 %v3785_v2  ;;  %3641 = vset.pattern.permute.xlu1 %v3786_v3  ;;  %v286_v5 = vld [vmem:[%s5261_s1 + $0x50] sm:$0xff]  ;;  %v285_v6 = vld [vmem:[%s5261_s1 + $0x48] sm:$0xff]  ;;  %v507_v7 = vld [vmem:[%s5262_s2 + $0x78] sm:$0xff]  ;;  %vm3788_vm0 = vmmov 0   ;;  %s2035_s14 = sld [smem:[#allocation2]]  ;;  %s2754_s16 = sshll.u32 %s3854_s6, 4 }
  0x17   : > { %453 = vperm.xlu0 %3640, %v291_v0   ;;  %364 = vperm.xlu1 %3641, %v290_v1   ;;  %v282_v8 = vld [vmem:[%s5261_s1 + $0x30] sm:$0xff]  ;;  %v288_v9 = vld [vmem:[%s5261_s1 + $0x60] sm:$0xff]  ;;  %v281_v10 = vld [vmem:[%s5261_s1 + $0x28] sm:$0xff]  ;;  %s271_s9 = scalar_select %p270_p10, %s3854_s6, 1 }
  0x18   : > { %v506_v11 = vld [vmem:[%s5262_s2 + $0x70] sm:$0xff]  ;;  %v3926_v13 = vld [vmem:[%s5261_s1 + $0x8] sm:$0xff]  ;;  %v287_v14 = vld [vmem:[%s5261_s1 + $0x58] sm:$0xff]  ;;  %s5225_s21 = scalar_lea.hbm %s5267_s7, %s2754_s16  ;;  %s3789_s6 = smov [#allocation3]  }
  0x19   : > { %v3919_v12 = vld [vmem:[%s5261_s1 + $0x10] sm:$0xff]  ;;  %v504_v15 = vld [vmem:[%s5262_s2 + $0x60] sm:$0xff]  ;;  %v505_v16 = vld [vmem:[%s5262_s2 + $0x68] sm:$0xff]  ;;  %s2751_s15 = sshll.u32 %s271_s9, 1  ;;  %s3727_s24 = sshll.u32 %s3789_s6, 4  ;;  %s3728_s24 = int_to_ptr.vmem [resolvable:$false] %s3727_s24 }
  0x1a   : > { %v503_v17 = vld [vmem:[%s5262_s2 + $0x58] sm:$0xff]  ;;  %v284_v18 = vld [vmem:[%s5261_s1 + $0x40] sm:$0xff]  ;;  %v502_v20 = vld [vmem:[%s5262_s2 + $0x50] sm:$0xff]  ;;  %s273_s18 = scalar_lea.vmem %s5260_s0, %s2751_s15  ;;  %s268_s15 = sand.u32 1, %s3775_s27  }
  0x1b   : > { %3642 = vset.pattern.permute.xlu1 %v3785_v2  ;;  %445 = vperm.xlu0 %3640, %v289_v4   ;;  %v283_v19 = vld [vmem:[%s5261_s1 + $0x38] sm:$0xff]  ;;  %v501_v21 = vld [vmem:[%s5262_s2 + $0x48] sm:$0xff]  ;;  %v280_v22 = vld [vmem:[%s5261_s1 + $0x20] sm:$0xff]  ;;  %s269_s17 = scalar_lea.vmem [#allocation3], %s268_s15  ;;  %s2680_s22 = scalar_lea.sflag [#allocation4], %s268_s15 }
  0x1c   : > { %449 = vperm.xlu1 %3642, %v290_v1   ;;  %v279_v23 = vld [vmem:[%s5261_s1 + $0x18] sm:$0xff]  ;;  %v497_v24 = vld [vmem:[%s5262_s2 + $0x28] sm:$0xff]  ;;  %v500_v25 = vld [vmem:[%s5262_s2 + $0x40] sm:$0xff]  ;;  %s3729_s25 = scalar_lea.vmem %s3728_s24, 32 }
  0x1d   : > { %v276_v26 = vld [vmem:[%s5261_s1] sm:$0xff]  ;;  %v493_v27 = vld [vmem:[%s5262_s2 + $0x8] sm:$0xff]  ;;  %v499_v28 = vld [vmem:[%s5262_s2 + $0x38] sm:$0xff] }
  0x1e   : > { %v651_v29 = vld [vmem:[%s5264_s4 + $0x78] sm:$0xff]  ;;  %v649_v30 = vld [vmem:[%s5264_s4 + $0x68] sm:$0xff]  ;;  %v498_v31 = vld [vmem:[%s5262_s2 + $0x30] sm:$0xff] }
  0x1f   : > { %433 = vperm.xlu0 %3640, %v286_v5   ;;  %v647_v32 = vld [vmem:[%s5264_s4 + $0x58] sm:$0xff]  ;;  %v645_v33 = vld [vmem:[%s5264_s4 + $0x48] sm:$0xff]  ;;  %v496_v36 = vld [vmem:[%s5262_s2 + $0x20] sm:$0xff] }
  0x20   : > { %3643 = vset.pattern.permute.xlu1 %v3786_v3  ;;  %v643_v34 = vld [vmem:[%s5264_s4 + $0x38] sm:$0xff]  ;;  %v641_v35 = vld [vmem:[%s5264_s4 + $0x28] sm:$0xff]  ;;  %v494_v40 = vld [vmem:[%s5262_s2 + $0x10] sm:$0xff] }
  0x21   : > { %359 = vperm.xlu1 %3643, %v289_v4   ;;  %v639_v37 = vld [vmem:[%s5264_s4 + $0x18] sm:$0xff]  ;;  %v637_v38 = vld [vmem:[%s5264_s4 + $0x8] sm:$0xff]  ;;  %v492_v41 = vld [vmem:[%s5262_s2] sm:$0xff] }
  0x22   : > { %v495_v39 = vld [vmem:[%s5262_s2 + $0x18] sm:$0xff]  ;;  %v650_v44 = vld [vmem:[%s5264_s4 + $0x70] sm:$0xff]  ;;  %v648_v47 = vld [vmem:[%s5264_s4 + $0x60] sm:$0xff] }
  0x23   : > { %429 = vperm.xlu0 %3640, %v285_v6   ;;  %v620_v48 = vld [vmem:[%s5263_s3] sm:$0xff]  ;;  %v646_v53 = vld [vmem:[%s5264_s4 + $0x50] sm:$0xff] }
  0x24   : > { %v4038_v49 = vand.u32 4294901760, %v620_v48  ;;  %v644_v58 = vld [vmem:[%s5264_s4 + $0x40] sm:$0xff]  ;;  %v642_v61 = vld [vmem:[%s5264_s4 + $0x30] sm:$0xff] }
  0x25   : > { %585 = vperm.xlu1 %3643, %v507_v7   ;;  %v4067_v62 = vld [vmem:[%s273_s18 + $0x1] ss:$0 sm:$0xff]  ;;  %v4071_v1 = vld [vmem:[%s273_s18] ss:$0 sm:$0xff]  ;;  %s2692_s18 = sshll.u32 %s269_s17, 4  ;;  %s2693_s18 = int_to_ptr.vmem [resolvable:$true] %s2692_s18 }
  0x26   : > { %5313 = vst [vmem:[#allocation6_spill] sm:$0xff] %v4038_v49  ;;  %v4043_v51 = vsub.f32 %v620_v48, %v4038_v49  ;;  %3139 = vmatprep.mubr.f32.mxu1 %v4038_v49  ;;  %s3723_s23 = scalar_lea.vmem %s2693_s18, 16  ;;  %p3730_p0 = scmp.lt.s32.totalorder %s2693_s18, %s3728_s24 }
  0x27   : > { %417 = vperm.xlu0 %3640, %v282_v8   ;;  %p3724_p11 = scmp.ne.s32.totalorder %s2693_s18, %s3723_s23  ;;  %p3731_p1 = scmp.lt.s32.totalorder %s3729_s25, %s3723_s23 }
  0x28   : > { %v5268_v54 = vand.u32 4294901760, %v4043_v51 }
  0x29   : > { %3644 = vset.pattern.permute.xlu1 %v3785_v2  ;;  %p3725_p12 = pnand %p3724_p11, %p3871_p5  ;;  %p3732_p2 = por %p3731_p1, %p3730_p0 }
  0x2a   : > { %441 = vperm.xlu1 %3644, %v288_v9   ;;  %v816_v56 = vsub.f32 %v4043_v51, %v5268_v54 }
  0x2b   : > { %413 = vperm.xlu0 %3640, %v281_v10   ;;  %p3726_p13 = pneg %p3725_p12 }
  0x2c   : > { %v817_v59 = vand.u32 4294901760, %v816_v56 }
  0x2d   : > { %p3733_p3 = pnand %p3732_p2, %p3726_p13 }
  0x2e   : > { %3645 = vset.pattern.permute.xlu1 %v3786_v3  ;;  %3083 = vmatprep.mubr.f32.mxu0 %v817_v59 }
  0x2f   : > { %580 = vperm.xlu1 %3645, %v506_v11   ;;  %401 = vperm.xlu0 %3640, %v3919_v12  }
  0x33   : > { %3646 = vset.pattern.permute.xlu1 %v3785_v2  ;;  %397 = vperm.xlu0 %3640, %v3926_v13  }
  0x34   : > { %437 = vperm.xlu1 %3646, %v287_v14  }
  0x37   : > { %3656 = vset.pattern.permute.xlu0 %v3786_v3 }
  0x38   : > { %3647 = vset.pattern.permute.xlu1 %v3786_v3  ;;  %369 = vperm.xlu0 %3656, %v291_v0  }
  0x39   : > { %344 = vperm.xlu1 %3647, %v286_v5  }
  0x3c   : > { %354 = vperm.xlu0 %3656, %v288_v9  }
  0x3d   : > { %570 = vperm.xlu1 %3647, %v504_v15  }
  0x40   : > { %349 = vperm.xlu0 %3656, %v287_v14  }
  0x41   : > { %339 = vperm.xlu1 %3647, %v285_v6  }
  0x44   : > { %575 = vperm.xlu0 %3656, %v505_v16  }
  0x45   : > { %565 = vperm.xlu1 %3647, %v503_v17  }
  0x48   : > { %334 = vperm.xlu0 %3656, %v284_v18  }
  0x49   : > { %3648 = vset.pattern.permute.xlu1 %v3785_v2 }
  0x4a   : > { %425 = vperm.xlu1 %3648, %v284_v18  }
  0x4c   : > { %329 = vperm.xlu0 %3656, %v283_v19  }
  0x4e   : > { %3649 = vset.pattern.permute.xlu1 %v3786_v3 }
  0x4f   : > { %560 = vperm.xlu1 %3649, %v502_v20  }
  0x50   : > { %555 = vperm.xlu0 %3656, %v501_v21  }
  0x53   : > { %3650 = vset.pattern.permute.xlu1 %v3785_v2 }
  0x54   : > { %421 = vperm.xlu1 %3650, %v283_v19   ;;  %314 = vperm.xlu0 %3656, %v280_v22  }
  0x58   : > { %3651 = vset.pattern.permute.xlu1 %v3786_v3  ;;  %309 = vperm.xlu0 %3656, %v279_v23  }
  0x59   : > { %324 = vperm.xlu1 %3651, %v282_v8   ;;  %v638_v8 = vld [vmem:[%s5264_s4 + $0x10] sm:$0xff] }
  0x5c   : > { %535 = vperm.xlu0 %3656, %v497_v24  }
  0x5d   : > { %550 = vperm.xlu1 %3651, %v500_v25  }
  0x60   : > { %294 = vperm.xlu0 %3656, %v276_v26  }
  0x61   : > { %319 = vperm.xlu1 %3651, %v281_v10  }
  0x64   : > { %515 = vperm.xlu0 %3656, %v493_v27  }
  0x65   : > { %545 = vperm.xlu1 %3651, %v499_v28  }
  0x68   : > { %729 = vperm.xlu0 %3656, %v651_v29  }
  0x69   : > { %3652 = vset.pattern.permute.xlu1 %v3785_v2 }
  0x6a   : > { %409 = vperm.xlu1 %3652, %v280_v22  }
  0x6c   : > { %719 = vperm.xlu0 %3656, %v649_v30  }
  0x6e   : > { %3653 = vset.pattern.permute.xlu1 %v3786_v3 }
  0x6f   : > { %540 = vperm.xlu1 %3653, %v498_v31  }
  0x70   : > { %709 = vperm.xlu0 %3656, %v647_v32  }
  0x73   : > { %3654 = vset.pattern.permute.xlu1 %v3785_v2 }
  0x74   : > { %405 = vperm.xlu1 %3654, %v279_v23   ;;  %699 = vperm.xlu0 %3656, %v645_v33  }
  0x78   : > { %3655 = vset.pattern.permute.xlu1 %v3786_v3  ;;  %689 = vperm.xlu0 %3656, %v643_v34  }
  0x79   : > { %304 = vperm.xlu1 %3655, %v3919_v12   ;;  %v636_v12 = vld [vmem:[%s5264_s4] sm:$0xff] }
  0x7c   : > { %679 = vperm.xlu0 %3656, %v641_v35  }
  0x7d   : > { %530 = vperm.xlu1 %3655, %v496_v36  }
  0x80   : > { %669 = vperm.xlu0 %3656, %v639_v37  }
  0x81   : > { %299 = vperm.xlu1 %3655, %v3926_v13  }
  0x84   : > { %659 = vperm.xlu0 %3656, %v637_v38  }
  0x85   : > { %525 = vperm.xlu1 %3655, %v495_v39  }
  0x89   : > { %3657 = vset.pattern.permute.xlu1 %v3785_v2 }
  0x8a   : > { %393 = vperm.xlu1 %3657, %v276_v26  }
  0x8e   : > { %3658 = vset.pattern.permute.xlu1 %v3786_v3  ;;  %v640_v3 = vld [vmem:[%s5264_s4 + $0x20] sm:$0xff] }
  0x8f   : > { %520 = vperm.xlu1 %3658, %v494_v40  }
  0x92   : > { %v365_v42 = vpop.permute.xlu1 %364  ;;  %v454_v43 = vpop.permute.xlu0 %453 }
  0x93   : > { %510 = vperm.xlu1 %3658, %v492_v41   ;;  %v390_v4 = vmul.f32 %v4071_v1, %v365_v42  ;;  %v475_v13 = vmul.f32 %v4067_v62, %v454_v43 }
  0x96   : > { %v446_v45 = vpop.permute.xlu0 %445 }
  0x97   : > { %v450_v46 = vpop.permute.xlu1 %449  ;;  %724 = vperm.xlu1 %3658, %v650_v44   ;;  %v473_v23 = vmul.f32 %v4067_v62, %v446_v45 }
  0x98   : > { %v474_v2 = vmul.f32 %v4067_v62, %v450_v46 }
  0x9a   : > { %v4040_v50 = vpop.permute.xlu0 %433  ;;  %v490_v7 = vadd.f32 %v474_v2, %v390_v4 }
  0x9b   : > { %714 = vperm.xlu1 %3658, %v648_v47   ;;  %v470_v40 = vmul.f32 %v4067_v62, %v4040_v50 }
  0x9c   : > { %v360_v52 = vpop.permute.xlu1 %359 }
  0x9d   : > { %v389_v24 = vmul.f32 %v4071_v1, %v360_v52 }
  0x9e   : > { %v4051_v55 = vpop.permute.xlu0 %429 }
  0x9f   : > { %704 = vperm.xlu1 %3658, %v646_v53   ;;  %v489_v31 = vadd.f32 %v473_v23, %v389_v24  ;;  %v469_v43 = vmul.f32 %v4067_v62, %v4051_v55 }
  0xa0   : > { %v586_v57 = vpop.permute.xlu1 %585 }
  0xa2   : > { %v4059_v60 = vpop.permute.xlu0 %417 }
  0xa3   : > { %694 = vperm.xlu1 %3658, %v644_v58  }
  0xa5   : > { %v442_v63 = vpop.permute.xlu1 %441 }
  0xa6   : > { %v4069_v0 = vpop.permute.xlu0 %413  ;;  %v472_v19 = vmul.f32 %v4067_v62, %v442_v63 }
  0xa7   : > { %684 = vperm.xlu1 %3658, %v642_v61  }
  0xaa   : > { %v581_v5 = vpop.permute.xlu1 %580  ;;  %v4078_v6 = vpop.permute.xlu0 %401 }
  0xab   : > { %674 = vperm.xlu1 %3658, %v640_v3   ;;  %v602_v9 = vadd.f32 %v581_v5, %v490_v7 }
  0xad   : > { %3659 = vtanh.f32 %v602_v9 }
  0xae   : > { %v4083_v10 = vpop.permute.xlu0 %397 }
  0xaf   : > { %v438_v11 = vpop.permute.xlu1 %437  ;;  %664 = vperm.xlu1 %3658, %v638_v8  }
  0xb0   : > { %v471_v27 = vmul.f32 %v4067_v62, %v438_v11 }
  0xb3   : > { %v370_v14 = vpop.permute.xlu0 %369  ;;  %654 = vperm.xlu1 %3658, %v636_v12  }
  0xb4   : > { %v391_v15 = vmul.f32 %v4071_v1, %v370_v14  ;;  %v345_v16 = vpop.permute.xlu1 %344 }
  0xb5   : > { %v386_v41 = vmul.f32 %v4071_v1, %v345_v16 }
  0xb6   : > { %v491_v17 = vadd.f32 %v475_v13, %v391_v15 }
  0xb7   : > { %v355_v18 = vpop.permute.xlu0 %354  ;;  %v486_v52 = vadd.f32 %v470_v40, %v386_v41 }
  0xb8   : > { %v603_v20 = vadd.f32 %v586_v57, %v491_v17  ;;  %v388_v21 = vmul.f32 %v4071_v1, %v355_v18  ;;  %v571_v22 = vpop.permute.xlu1 %570 }
  0xba   : > { %3661 = vtanh.f32 %v603_v20  ;;  %v488_v25 = vadd.f32 %v472_v19, %v388_v21  ;;  %v3660_v33 = vpop.eup %3659 }
  0xbb   : > { %v350_v26 = vpop.permute.xlu0 %349  ;;  %v4096_v38 = vand.u32 4294901760, %v3660_v33 }
  0xbc   : > { %v600_v28 = vadd.f32 %v571_v22, %v488_v25  ;;  %v387_v29 = vmul.f32 %v4071_v1, %v350_v26  ;;  %v340_v30 = vpop.permute.xlu1 %339 }
  0xbd   : > { %v385_v44 = vmul.f32 %v4071_v1, %v340_v30  ;;  %v4105_v45 = vsub.f32 %v3660_v33, %v4096_v38 }
  0xbe   : > { %3663 = vtanh.f32 %v600_v28  ;;  %v487_v32 = vadd.f32 %v471_v27, %v387_v29 }
  0xbf   : > { %v576_v34 = vpop.permute.xlu0 %575  ;;  %v485_v50 = vadd.f32 %v469_v43, %v385_v44  ;;  %v4114_v57 = vand.u32 4294901760, %v4105_v45 }
  0xc0   : > { %v601_v35 = vadd.f32 %v576_v34, %v489_v31  ;;  %v566_v36 = vpop.permute.xlu1 %565 }
  0xc1   : > { %v599_v37 = vadd.f32 %v566_v36, %v487_v32  ;;  %v984_v4 = vsub.f32 %v4105_v45, %v4114_v57 }
  0xc2   : > { %3665 = vtanh.f32 %v601_v35 }
  0xc3   : > { %3667 = vtanh.f32 %v599_v37  ;;  %v335_v39 = vpop.permute.xlu0 %334  ;;  %v985_v14 = vand.u32 4294901760, %v984_v4 }
  0xc4   : > { %v384_v17 = vmul.f32 %v4071_v1, %v335_v39 }
  0xc5   : > { %v426_v42 = vpop.permute.xlu1 %425 }
  0xc6   : > { %v468_v18 = vmul.f32 %v4067_v62, %v426_v42  ;;  %v465_v42 = vmul.f32 %v4067_v62, %v4069_v0 }
  0xc7   : > { %v3662_v46 = vpop.eup %3661  ;;  %v330_v47 = vpop.permute.xlu0 %329 }
  0xc8   : > { %v4107_v48 = vand.u32 4294901760, %v3662_v46  ;;  %v484_v26 = vadd.f32 %v468_v18, %v384_v17  ;;  %v383_v35 = vmul.f32 %v4071_v1, %v330_v47 }
  0xca   : > { %v561_v53 = vpop.permute.xlu1 %560  ;;  %3051 = vmatprep.subr.mxu0 %v4107_v48  ;;  %v4111_v56 = vsub.f32 %v3662_v46, %v4107_v48 }
  0xcb   : > { %v3664_v55 = vpop.eup %3663  ;;  %v598_v58 = vadd.f32 %v561_v53, %v486_v52  ;;  %v556_v59 = vpop.permute.xlu0 %555  ;;  %3052 = vmatpush3.msra.mxu0 %v4107_v48 }
  0xcc   : > { %v4117_v61 = vand.u32 4294901760, %v3664_v55  ;;  %v597_v63 = vadd.f32 %v556_v59, %v485_v50  ;;  %3053 = vmatprep.subr.mxu0 %v4096_v38  ;;  %v4121_v2 = vand.u32 4294901760, %v4111_v56 }
  0xcd   : > { %3669 = vtanh.f32 %v598_v58  ;;  %3054 = vmatpush3.msra.mxu0 %v4096_v38 }
  0xce   : > { %3671 = vtanh.f32 %v597_v63  ;;  %v977_v3 = vsub.f32 %v4111_v56, %v4121_v2  ;;  %v4129_v5 = vsub.f32 %v3664_v55, %v4117_v61 }
  0xcf   : > { %v3666_v7 = vpop.eup %3665  ;;  %v422_v8 = vpop.permute.xlu1 %421 }
  0xd0   : > { %v3668_v9 = vpop.eup %3667  ;;  %v4131_v11 = vand.u32 4294901760, %v3666_v7  ;;  %v978_v12 = vand.u32 4294901760, %v977_v3  ;;  %v4140_v16 = vand.u32 4294901760, %v4129_v5  ;;  %v4148_v20 = vpop.permute.xlu0 %314  ;;  %v467_v37 = vmul.f32 %v4067_v62, %v422_v8 }
  0xd1   : > { %v4133_v13 = vand.u32 4294901760, %v3668_v9 }
  0xd2   : > { %3055 = vmatprep.subr.mxu0 %v4131_v11  ;;  %3107 = vmatprep.subr.mxu1 %v978_v12  ;;  %v4137_v15 = vsub.f32 %v3666_v7, %v4131_v11  ;;  %5314 = vst [vmem:[#allocation7_spill] sm:$0xff] %v4140_v16  ;;  %v998_v25 = vsub.f32 %v4129_v5, %v4140_v16 }
  0xd3   : > { %3056 = vmatpush3.msra.mxu0 %v4131_v11  ;;  %3108 = vmatpush3.msra.mxu1 %v978_v12  ;;  %v4146_v19 = vsub.f32 %v3668_v9, %v4133_v13  ;;  %v483_v52 = vadd.f32 %v467_v37, %v383_v35  ;;  %v466_v12 = vmul.f32 %v4067_v62, %v4059_v60 }
  0xd4   : > { %v325_v21 = vpop.permute.xlu1 %324  ;;  %3057 = vmatprep.subr.mxu0 %v4117_v61  ;;  %3109 = vmatprep.subr.mxu1 %v985_v14  ;;  %v4152_v22 = vand.u32 4294901760, %v4137_v15  ;;  %v4166_v32 = vpop.permute.xlu0 %309  ;;  %v999_v33 = vand.u32 4294901760, %v998_v25  ;;  %v380_v37 = vmul.f32 %v4071_v1, %v4148_v20 }
  0xd5   : > { %3058 = vmatpush3.msra.mxu0 %v4117_v61  ;;  %3110 = vmatpush3.msra.mxu1 %v985_v14  ;;  %v4156_v23 = vand.u32 4294901760, %v4146_v19  ;;  %v382_v8 = vmul.f32 %v4071_v1, %v325_v21 }
  0xd6   : > { %3059 = vmatprep.subr.mxu0 %v4133_v13  ;;  %v991_v24 = vsub.f32 %v4137_v15, %v4152_v22 }
  0xd7   : > { %5315 = vst [vmem:[#allocation8_spill] sm:$0xff] %v4156_v23  ;;  %3060 = vmatpush3.msra.mxu0 %v4133_v13  ;;  %v1005_v29 = vsub.f32 %v4146_v19, %v4156_v23  ;;  %v482_v18 = vadd.f32 %v466_v12, %v382_v8 }
  0xd8   : > { %v551_v27 = vpop.permute.xlu1 %550  ;;  %v992_v28 = vand.u32 4294901760, %v991_v24  ;;  %v536_v53 = vpop.permute.xlu0 %535 }
  0xd9   : > { %v596_v30 = vadd.f32 %v551_v27, %v484_v26  ;;  %v1006_v41 = vand.u32 4294901760, %v1005_v29 }
  0xda   : > { %v3670_v31 = vpop.eup %3669  ;;  %3111 = vmatprep.subr.mxu1 %v992_v28 }
  0xdb   : > { %v3672_v34 = vpop.eup %3671  ;;  %v4169_v36 = vand.u32 4294901760, %v3670_v31  ;;  %3673 = vtanh.f32 %v596_v30  ;;  %3112 = vmatpush3.msra.mxu1 %v992_v28 }
  0xdc   : > { %v4172_v39 = vand.u32 4294901760, %v3672_v34  ;;  %v320_v40 = vpop.permute.xlu1 %319  ;;  %3113 = vmatprep.subr.mxu1 %v999_v33 }
  0xdd   : > { %v381_v43 = vmul.f32 %v4071_v1, %v320_v40  ;;  %3061 = vmatprep.subr.mxu0 %v4169_v36  ;;  %3114 = vmatpush3.msra.mxu1 %v999_v33  ;;  %v4179_v44 = vsub.f32 %v3670_v31, %v4169_v36 }
  0xde   : > { %3062 = vmatpush3.msra.mxu0 %v4169_v36  ;;  %3115 = vmatprep.subr.mxu1 %v1006_v41  ;;  %v4183_v46 = vsub.f32 %v3672_v34, %v4172_v39 }
  0xdf   : > { %v481_v47 = vadd.f32 %v465_v42, %v381_v43  ;;  %3063 = vmatprep.subr.mxu0 %v4172_v39  ;;  %3116 = vmatpush3.msra.mxu1 %v1006_v41  ;;  %v4187_v0 = vand.u32 4294901760, %v4179_v44 }
  0xe0   : > { %v546_v50 = vpop.permute.xlu1 %545  ;;  %3064 = vmatpush3.msra.mxu0 %v4172_v39  ;;  %v4191_v55 = vand.u32 4294901760, %v4183_v46 }
  0xe1   : > { %5316 = vst [vmem:[#allocation9_spill] sm:$0xff] %v4187_v0  ;;  %v593_v58 = vadd.f32 %v536_v53, %v481_v47  ;;  %v595_v59 = vadd.f32 %v546_v50, %v483_v52  ;;  %v1012_v63 = vsub.f32 %v4179_v44, %v4187_v0 }
  0xe2   : > { %5317 = vst [vmem:[#allocation10_spill] sm:$0xff] %v4191_v55  ;;  %v1019_v3 = vsub.f32 %v4183_v46, %v4191_v55 }
  0xe3   : > { %v1013_v4 = vand.u32 4294901760, %v1012_v63  ;;  %3675 = vtanh.f32 %v595_v59 }
  0xe4   : > { %v1020_v7 = vand.u32 4294901760, %v1019_v3  ;;  %3677 = vtanh.f32 %v593_v58  ;;  %v295_v58 = vpop.permute.xlu0 %294  ;;  %v461_v3 = vmul.f32 %v4067_v62, %v4083_v10 }
  0xe5   : > { %v410_v9 = vpop.permute.xlu1 %409  ;;  %3117 = vmatprep.subr.mxu1 %v1013_v4 }
  0xe6   : > { %3118 = vmatpush3.msra.mxu1 %v1013_v4  ;;  %v464_v33 = vmul.f32 %v4067_v62, %v410_v9 }
  0xe7   : > { %3119 = vmatprep.subr.mxu1 %v1020_v7 }
  0xe8   : > { %v3674_v14 = vpop.eup %3673  ;;  %3120 = vmatpush3.msra.mxu1 %v1020_v7  ;;  %v480_v42 = vadd.f32 %v464_v33, %v380_v37  ;;  %v379_v7 = vmul.f32 %v4071_v1, %v4166_v32  ;;  %v516_v32 = vpop.permute.xlu0 %515 }
  0xe9   : > { %v4200_v17 = vand.u32 4294901760, %v3674_v14 }
  0xea   : > { %v541_v24 = vpop.permute.xlu1 %540 }
  0xeb   : > { %v594_v25 = vadd.f32 %v541_v24, %v482_v18  ;;  %3065 = vmatprep.subr.mxu0 %v4200_v17  ;;  %v4204_v26 = vsub.f32 %v3674_v14, %v4200_v17 }
  0xec   : > { %3066 = vmatpush3.msra.mxu0 %v4200_v17 }
  0xed   : > { %3679 = vtanh.f32 %v594_v25  ;;  %v4208_v21 = vand.u32 4294901760, %v4204_v26 }
  0xef   : > { %5318 = vst [vmem:[#allocation11_spill] sm:$0xff] %v4208_v21  ;;  %v406_v60 = vpop.permute.xlu1 %405  ;;  %v1026_v27 = vsub.f32 %v4204_v26, %v4208_v21 }
  0xf0   : > { %v3676_v28 = vpop.eup %3675  ;;  %v463_v63 = vmul.f32 %v4067_v62, %v406_v60 }
  0xf1   : > { %v1027_v29 = vand.u32 4294901760, %v1026_v27  ;;  %v3678_v30 = vpop.eup %3677  ;;  %v4212_v31 = vand.u32 4294901760, %v3676_v28 }
  0xf2   : > { %v4221_v40 = vand.u32 4294901760, %v3678_v30  ;;  %v479_v10 = vadd.f32 %v463_v63, %v379_v7  ;;  %v376_v63 = vmul.f32 %v4071_v1, %v295_v58 }
  0xf3   : > { %3121 = vmatprep.subr.mxu1 %v1027_v29  ;;  %3067 = vmatprep.subr.mxu0 %v4212_v31  ;;  %v4217_v35 = vsub.f32 %v3676_v28, %v4212_v31 }
  0xf4   : > { %v305_v34 = vpop.permute.xlu1 %304  ;;  %3122 = vmatpush3.msra.mxu1 %v1027_v29  ;;  %3068 = vmatpush3.msra.mxu0 %v4212_v31  ;;  %v4230_v53 = vsub.f32 %v3678_v30, %v4221_v40 }
  0xf5   : > { %v4225_v41 = vand.u32 4294901760, %v4217_v35  ;;  %v378_v30 = vmul.f32 %v4071_v1, %v305_v34 }
  0xf6   : > { %v4245_v12 = vand.u32 4294901760, %v4230_v53 }
  0xf7   : > { %5319 = vst [vmem:[#allocation12_spill] sm:$0xff] %v4225_v41  ;;  %v1033_v47 = vsub.f32 %v4217_v35, %v4225_v41  ;;  %v628_v41 = vld [vmem:[%s5263_s3 + $0x40] sm:$0xff] }
  0xf8   : > { %v531_v43 = vpop.permute.xlu1 %530  ;;  %5320 = vst [vmem:[#allocation13_spill] sm:$0xff] %v4245_v12  ;;  %v1047_v28 = vsub.f32 %v4230_v53, %v4245_v12 }
  0xf9   : > { %v592_v52 = vadd.f32 %v531_v43, %v480_v42  ;;  %v1034_v59 = vand.u32 4294901760, %v1033_v47  ;;  %v462_v42 = vmul.f32 %v4067_v62, %v4078_v6  ;;  %v621_v6 = vld [vmem:[%s5263_s3 + $0x8] sm:$0xff] }
  0xfa   : > { %v3680_v50 = vpop.eup %3679  ;;  %v1048_v37 = vand.u32 4294901760, %v1047_v28 }
  0xfb   : > { %v4232_v20 = vand.u32 4294901760, %v3680_v50  ;;  %3681 = vtanh.f32 %v592_v52  ;;  %3123 = vmatprep.subr.mxu1 %v1034_v59 }
  0xfc   : > { %v300_v4 = vpop.permute.xlu1 %299  ;;  %3124 = vmatpush3.msra.mxu1 %v1034_v59 }
  0xfd   : > { %v377_v8 = vmul.f32 %v4071_v1, %v300_v4  ;;  %3069 = vmatprep.subr.mxu0 %v4232_v20  ;;  %v4242_v9 = vsub.f32 %v3680_v50, %v4232_v20  ;;  %v478_v50 = vadd.f32 %v462_v42, %v378_v30  ;;  %v622_v1 = vld [vmem:[%s5263_s3 + $0x10] sm:$0xff]  ;;  %v624_v30 = vld [vmem:[%s5263_s3 + $0x20] sm:$0xff] }
  0xfe   : > { %3070 = vmatpush3.msra.mxu0 %v4232_v20 }
  0xff   : > { %v477_v14 = vadd.f32 %v461_v3, %v377_v8  ;;  %3071 = vmatprep.subr.mxu0 %v4221_v40  ;;  %v4250_v18 = vand.u32 4294901760, %v4242_v9 }
 0x100   : > { %v526_v24 = vpop.permute.xlu1 %525  ;;  %3072 = vmatpush3.msra.mxu0 %v4221_v40 }
 0x101   : > { %5321 = vst [vmem:[#allocation14_spill] sm:$0xff] %v4250_v18  ;;  %v589_v25 = vadd.f32 %v516_v32, %v477_v14  ;;  %v591_v60 = vadd.f32 %v526_v24, %v479_v10  ;;  %v1040_v27 = vsub.f32 %v4242_v9, %v4250_v18  ;;  %v4280_v14 = vand.u32 4294901760, %v621_v6  ;;  %v623_v32 = vld [vmem:[%s5263_s3 + $0x18] sm:$0xff] }
 0x102   : > { %v4282_v10 = vand.u32 4294901760, %v622_v1 }
 0x103   : > { %v1041_v29 = vand.u32 4294901760, %v1040_v27  ;;  %3683 = vtanh.f32 %v591_v60  ;;  %v4290_v28 = vsub.f32 %v621_v6, %v4280_v14 }
 0x104   : > { %3685 = vtanh.f32 %v589_v25 }
 0x105   : > { %v394_v33 = vpop.permute.xlu1 %393  ;;  %3125 = vmatprep.subr.mxu1 %v1041_v29 }
 0x106   : > { %3126 = vmatpush3.msra.mxu1 %v1041_v29  ;;  %v460_v52 = vmul.f32 %v4067_v62, %v394_v33  ;;  %v4292_v29 = vand.u32 4294901760, %v623_v32 }
 0x107   : > { %3127 = vmatprep.subr.mxu1 %v1048_v37 }
 0x108   : > { %v3682_v43 = vpop.eup %3681  ;;  %3128 = vmatpush3.msra.mxu1 %v1048_v37  ;;  %v476_v4 = vadd.f32 %v460_v52, %v376_v63  ;;  %5323 = vst [vmem:[#allocation16_spill] sm:$0xff] %v4292_v29  ;;  %v4302_v37 = vsub.f32 %v622_v1, %v4282_v10  ;;  %v4317_v63 = vsub.f32 %v623_v32, %v4292_v29 }
 0x109   : > { %v4260_v47 = vand.u32 4294901760, %v3682_v43 }
 0x10a   : > { %v521_v59 = vpop.permute.xlu1 %520  ;;  %v5276_v6 = vand.u32 4294901760, %v4302_v37 }
 0x10b   : > { %v590_v34 = vadd.f32 %v521_v59, %v478_v50  ;;  %3073 = vmatprep.subr.mxu0 %v4260_v47  ;;  %v4266_v3 = vsub.f32 %v3682_v43, %v4260_v47  ;;  %v625_v43 = vld [vmem:[%s5263_s3 + $0x28] sm:$0xff]  ;;  %v4313_v50 = vand.u32 4294901760, %v624_v30  ;;  %v5271_v59 = vand.u32 4294901760, %v4290_v28 }
 0x10c   : > { %3074 = vmatpush3.msra.mxu0 %v4260_v47 }
 0x10d   : > { %3687 = vtanh.f32 %v590_v34  ;;  %v4273_v62 = vand.u32 4294901760, %v4266_v3 }
 0x10e   : > { %v511_v58 = vpop.permute.xlu1 %510 }
 0x10f   : > { %5322 = vst [vmem:[#allocation15_spill] sm:$0xff] %v4273_v62  ;;  %v588_v7 = vadd.f32 %v511_v58, %v476_v4  ;;  %v1054_v8 = vsub.f32 %v4266_v3, %v4273_v62  ;;  %v4322_v4 = vand.u32 4294901760, %v625_v43  ;;  %v626_v58 = vld [vmem:[%s5263_s3 + $0x30] sm:$0xff] }
 0x110   : > { %v3684_v24 = vpop.eup %3683  ;;  %v4348_v49 = vand.u32 4294901760, %v626_v58 }
 0x111   : > { %3689 = vtanh.f32 %v588_v7  ;;  %v1055_v25 = vand.u32 4294901760, %v1054_v8  ;;  %v3686_v60 = vpop.eup %3685  ;;  %v4287_v27 = vand.u32 4294901760, %v3684_v24 }
 0x112   : > { %v4304_v42 = vand.u32 4294901760, %v3686_v60  ;;  %v4376_v55 = vsub.f32 %v626_v58, %v4348_v49 }
 0x113   : > { %3129 = vmatprep.subr.mxu1 %v1055_v25  ;;  %3075 = vmatprep.subr.mxu0 %v4287_v27  ;;  %v4299_v33 = vsub.f32 %v3684_v24, %v4287_v27  ;;  %v4331_v24 = vsub.f32 %v624_v30, %v4313_v50  ;;  %v4346_v30 = vsub.f32 %v625_v43, %v4322_v4 }
 0x114   : > { %3130 = vmatpush3.msra.mxu1 %v1055_v25  ;;  %3076 = vmatpush3.msra.mxu0 %v4287_v27  ;;  %v4325_v1 = vsub.f32 %v3686_v60, %v4304_v42  ;;  %v826_v25 = vsub.f32 %v4290_v28, %v5271_v59  ;;  %v627_v60 = vld [vmem:[%s5263_s3 + $0x38] sm:$0xff] }
 0x115   : > { %v4311_v52 = vand.u32 4294901760, %v4299_v33  ;;  %5325 = vst [vmem:[#allocation18_spill] sm:$0xff] %v4331_v24  ;;  %v5330_v58 = vand.u32 4294901760, %v4331_v24 }
 0x116   : > { %v4355_v54 = vand.u32 4294901760, %v4325_v1 }
 0x117   : > { %5324 = vst [vmem:[#allocation17_spill] sm:$0xff] %v4311_v52  ;;  %v1061_v34 = vsub.f32 %v4299_v33, %v4311_v52  ;;  %v856_v21 = vsub.f32 %v4331_v24, %v5330_v58 }
 0x118   : > { %5326 = vst [vmem:[#allocation19_spill] sm:$0xff] %v4355_v54 }
 0x119   : > { %v1062_v8 = vand.u32 4294901760, %v1061_v34  ;;  %v836_v34 = vsub.f32 %v4302_v37, %v5276_v6  ;;  %v4359_v6 = vand.u32 4294901760, %v627_v60 }
 0x11a   : > { %v3688_v7 = vpop.eup %3687 }
 0x11b   : > { %v4333_v32 = vand.u32 4294901760, %v3688_v7  ;;  %3131 = vmatprep.subr.mxu1 %v1062_v8  ;;  %v837_v62 = vand.u32 4294901760, %v836_v34  ;;  %v629_v34 = vld [vmem:[%s5263_s3 + $0x48] sm:$0xff]  ;;  %v4394_v23 = vsub.f32 %v627_v60, %v4359_v6 }
 0x11c   : > { %3132 = vmatpush3.msra.mxu1 %v1062_v8  ;;  %v827_v8 = vand.u32 4294901760, %v826_v25  ;;  %v4407_v24 = vand.u32 4294901760, %v629_v34 }
 0x11d   : > { %3077 = vmatprep.subr.mxu0 %v4333_v32  ;;  %v4352_v59 = vsub.f32 %v3688_v7, %v4333_v32  ;;  %v5329_v7 = vand.u32 4294901760, %v4317_v63 }
 0x11e   : > { %v3690_v52 = vpop.eup %3689  ;;  %3078 = vmatpush3.msra.mxu0 %v4333_v32 }
 0x11f   : > { %v4361_v43 = vand.u32 4294901760, %v3690_v52  ;;  %3079 = vmatprep.subr.mxu0 %v4304_v42  ;;  %v4365_v12 = vand.u32 4294901760, %v4352_v59  ;;  %v846_v18 = vsub.f32 %v4317_v63, %v5329_v7  ;;  %v1075_v7 = vsub.f32 %v4325_v1, %v4355_v54 }
 0x120   : > { %3080 = vmatpush3.msra.mxu0 %v4304_v42 }
 0x121   : > { %5327 = vst [vmem:[#allocation20_spill] sm:$0xff] %v4361_v43  ;;  %5328 = vst [vmem:[#allocation21_spill] sm:$0xff] %v4365_v12  ;;  %3081 = vmatprep.subr.mxu0 %v4361_v43  ;;  %v1068_v25 = vsub.f32 %v4352_v59, %v4365_v12  ;;  %v4384_v0 = vsub.f32 %v3690_v52, %v4361_v43  ;;  %v4396_v12 = vand.u32 4294901760, %v628_v41  ;;  %v847_v54 = vand.u32 4294901760, %v846_v18 }
 0x122   : > { %3082 = vmatpush3.msra.mxu0 %v4361_v43  ;;  %v5332_v43 = vand.u32 4294901760, %v4346_v30 }
 0x123   : > { %3084 = vmatmul.mubr.f32.vlgmr.msra.gmra.mxu0 %v827_v8  ;;  %3163 = vmatprep.subr.mxu0 %v4111_v56  ;;  %v1069_v52 = vand.u32 4294901760, %v1068_v25  ;;  %v4400_v16 = vand.u32 4294901760, %v4384_v0  ;;  %v1076_v8 = vand.u32 4294901760, %v1075_v7  ;;  %v4418_v25 = vsub.f32 %v628_v41, %v4396_v12  ;;  %v631_v7 = vld [vmem:[%s5263_s3 + $0x58] sm:$0xff] }
 0x124   : > { %3164 = vmatpush3.msra.mxu0 %v4111_v56  ;;  %3086 = vmatprep.mubr.f32.mxu0 %v837_v62  ;;  %v866_v58 = vsub.f32 %v4346_v30, %v5332_v43  ;;  %v630_v56 = vld [vmem:[%s5263_s3 + $0x50] sm:$0xff]  ;;  %v857_v62 = vand.u32 4294901760, %v856_v21  ;;  %v5305_v43 = vand.u32 4294901760, %v4394_v23  ;;  %v4428_v21 = vsub.f32 %v629_v34, %v4407_v24  ;;  %v632_v34 = vld [vmem:[%s5263_s3 + $0x60] sm:$0xff] }
 0x125   : > { %5331 = vst [vmem:[#allocation22_spill] sm:$0xff] %v4400_v16  ;;  %3133 = vmatprep.subr.mxu1 %v1069_v52  ;;  %3165 = vmatprep.subr.mxu0 %v4105_v45  ;;  %v1082_v18 = vsub.f32 %v4384_v0, %v4400_v16  ;;  %v4430_v41 = vand.u32 4294901760, %v630_v56 }
 0x126   : > { %3134 = vmatpush3.msra.mxu1 %v1069_v52  ;;  %3166 = vmatpush3.msra.mxu0 %v4105_v45  ;;  %v867_v16 = vand.u32 4294901760, %v866_v58  ;;  %v5333_v52 = vand.u32 4294901760, %v4376_v55  ;;  %v5303_v58 = vand.u32 4294901760, %v4418_v25 }
 0x127   : > { %3087 = vmatmul.mubr.f32.gmra.mxu0 %v847_v54  ;;  %3135 = vmatprep.subr.mxu1 %v1076_v8  ;;  %v1083_v60 = vand.u32 4294901760, %v1082_v18  ;;  %v886_v54 = vsub.f32 %v4394_v23, %v5305_v43  ;;  %v5304_v18 = vand.u32 4294901760, %v4428_v21 }
 0x128   : > { %3167 = vmatprep.subr.mxu0 %v4137_v15  ;;  %3136 = vmatpush3.msra.mxu1 %v1076_v8  ;;  %v876_v45 = vsub.f32 %v4376_v55, %v5333_v52  ;;  %v4438_v8 = vand.u32 4294901760, %v631_v7  ;;  %v4462_v52 = vand.u32 4294901760, %v632_v34 }
 0x129   : > { %3168 = vmatpush3.msra.mxu0 %v4137_v15  ;;  %3137 = vmatprep.subr.mxu1 %v1083_v60 }
 0x12a   : > { %3169 = vmatprep.subr.mxu0 %v4129_v5  ;;  %3089 = vmatprep.mubr.f32.mxu0 %v857_v62  ;;  %v877_v15 = vand.u32 4294901760, %v876_v45  ;;  %v4447_v62 = vsub.f32 %v630_v56, %v4430_v41  ;;  %v4460_v56 = vsub.f32 %v631_v7, %v4438_v8  ;;  %v634_v7 = vld [vmem:[%s5263_s3 + $0x70] sm:$0xff] }
 0x12b   : > { %3138 = vmatpush3.msra.mxu1 %v1083_v60  ;;  %3170 = vmatpush3.msra.mxu0 %v4129_v5  ;;  %v633_v5 = vld [vmem:[%s5263_s3 + $0x68] sm:$0xff]  ;;  %v896_v60 = vsub.f32 %v4418_v25, %v5303_v58  ;;  %v4496_v43 = vand.u32 4294901760, %v634_v7 }
 0x12c   : > { %3090 = vmatmul.mubr.f32.gmra.mxu0 %v867_v16  ;;  %3140 = vmatmul.mubr.f32.vlgmr.msra.gmra.mxu1 %v4280_v14  ;;  %v887_v16 = vand.u32 4294901760, %v886_v54  ;;  %v5308_v45 = vand.u32 4294901760, %v4447_v62  ;;  %v4471_v54 = vand.u32 4294901760, %v633_v5  ;;  %v925_v58 = vand.u32 4294901760, %v4460_v56 }
 0x12d   : > { %3171 = vmatprep.subr.mxu0 %v4146_v19  ;;  %3219 = vmatprep.subr.mxu1 %v4107_v48 }
 0x12e   : > { %3172 = vmatpush3.msra.mxu0 %v4146_v19  ;;  %3220 = vmatpush3.msra.mxu1 %v4107_v48  ;;  %v906_v19 = vsub.f32 %v4428_v21, %v5304_v18  ;;  %v4481_v18 = vsub.f32 %v632_v34, %v4462_v52  ;;  %v4494_v34 = vsub.f32 %v633_v5, %v4471_v54 }
 0x12f   : > { %3173 = vmatprep.subr.mxu0 %v4179_v44  ;;  %3221 = vmatprep.subr.mxu1 %v4096_v38 }
 0x130   : > { %3092 = vmatprep.mubr.f32.mxu0 %v877_v15  ;;  %3142 = vmatprep.mubr.f32.mxu1 %v4282_v10  ;;  %v897_v15 = vand.u32 4294901760, %v896_v60  ;;  %v916_v60 = vsub.f32 %v4447_v62, %v5308_v45  ;;  %v4512_v45 = vsub.f32 %v634_v7, %v4496_v43 }
 0x131   : > { %3174 = vmatpush3.msra.mxu0 %v4179_v44  ;;  %3222 = vmatpush3.msra.mxu1 %v4096_v38  ;;  %v635_v44 = vld [vmem:[%s5263_s3 + $0x78] sm:$0xff] }
 0x132   : > { %3093 = vmatmul.mubr.f32.gmra.mxu0 %v887_v16  ;;  %3143 = vmatmul.mubr.f32.gmra.mxu1 %v4292_v29  ;;  %v907_v16 = vand.u32 4294901760, %v906_v19  ;;  %v935_v19 = vand.u32 4294901760, %v4481_v18  ;;  %v4505_v29 = vand.u32 4294901760, %v635_v44  ;;  %v917_v5 = vand.u32 4294901760, %v916_v60 }
 0x133   : > { %3175 = vmatprep.subr.mxu0 %v4183_v46  ;;  %3223 = vmatprep.subr.mxu1 %v4131_v11  ;;  %v955_v7 = vand.u32 4294901760, %v4512_v45 }
 0x134   : > { %3176 = vmatpush3.msra.mxu0 %v4183_v46  ;;  %3224 = vmatpush3.msra.mxu1 %v4131_v11  ;;  %v926_v46 = vsub.f32 %v4460_v56, %v925_v58  ;;  %v4522_v60 = vsub.f32 %v635_v44, %v4505_v29 }
 0x135   : > { %3177 = vmatprep.subr.mxu0 %v4204_v26  ;;  %3225 = vmatprep.subr.mxu1 %v4117_v61 }
 0x136   : > { %3095 = vmatprep.mubr.f32.mxu0 %v897_v15  ;;  %3145 = vmatprep.mubr.f32.mxu1 %v4313_v50  ;;  %v945_v15 = vand.u32 4294901760, %v4494_v34 }
 0x137   : > { %3178 = vmatpush3.msra.mxu0 %v4204_v26  ;;  %3226 = vmatpush3.msra.mxu1 %v4117_v61  ;;  %v927_v26 = vand.u32 4294901760, %v926_v46  ;;  %v965_v46 = vand.u32 4294901760, %v4522_v60 }
 0x138   : > { %3096 = vmatmul.mubr.f32.gmra.mxu0 %v907_v16  ;;  %3146 = vmatmul.mubr.f32.gmra.mxu1 %v4322_v4  ;;  %v936_v16 = vsub.f32 %v4481_v18, %v935_v19 }
 0x139   : > { %3179 = vmatprep.subr.mxu0 %v4217_v35  ;;  %3227 = vmatprep.subr.mxu1 %v4133_v13 }
 0x13a   : > { %3180 = vmatpush3.msra.mxu0 %v4217_v35  ;;  %3228 = vmatpush3.msra.mxu1 %v4133_v13  ;;  %v946_v35 = vsub.f32 %v4494_v34, %v945_v15  ;;  %v937_v44 = vand.u32 4294901760, %v936_v16 }
 0x13b   : > { %3181 = vmatprep.subr.mxu0 %v4242_v9  ;;  %3229 = vmatprep.subr.mxu1 %v4169_v36 }
 0x13c   : > { %3098 = vmatprep.mubr.f32.mxu0 %v917_v5  ;;  %3148 = vmatprep.mubr.f32.mxu1 %v4348_v49  ;;  %v947_v5 = vand.u32 4294901760, %v946_v35  ;;  %v5351_v35 = vld [vmem:[#allocation13_spill] sm:$0xff] }
 0x13d   : > { %3182 = vmatpush3.msra.mxu0 %v4242_v9  ;;  %3230 = vmatpush3.msra.mxu1 %v4169_v36  ;;  %v956_v9 = vsub.f32 %v4512_v45, %v955_v7 }
 0x13e   : > { %3099 = vmatmul.mubr.f32.gmra.mxu0 %v927_v26  ;;  %3149 = vmatmul.mubr.f32.gmra.mxu1 %v4359_v6  ;;  %v966_v26 = vsub.f32 %v4522_v60, %v965_v46 }
 0x13f   : > { %3183 = vmatprep.subr.mxu0 %v4230_v53  ;;  %3231 = vmatprep.subr.mxu1 %v4172_v39 }
 0x140   : > { %3184 = vmatpush3.msra.mxu0 %v4230_v53  ;;  %3232 = vmatpush3.msra.mxu1 %v4172_v39  ;;  %v957_v53 = vand.u32 4294901760, %v956_v9  ;;  %v967_v16 = vand.u32 4294901760, %v966_v26 }
 0x141   : > { %3185 = vmatprep.subr.mxu0 %v4266_v3  ;;  %3233 = vmatprep.subr.mxu1 %v4200_v17 }
 0x142   : > { %3101 = vmatprep.mubr.f32.mxu0 %v937_v44  ;;  %3151 = vmatprep.mubr.f32.mxu1 %v4396_v12 }
 0x143   : > { %3186 = vmatpush3.msra.mxu0 %v4266_v3  ;;  %3234 = vmatpush3.msra.mxu1 %v4200_v17  ;;  %v5336_v3 = vld [vmem:[#allocation18_spill] sm:$0xff] }
 0x144   : > { %3102 = vmatmul.mubr.f32.gmra.mxu0 %v947_v5  ;;  %3152 = vmatmul.mubr.f32.gmra.mxu1 %v4407_v24 }
 0x145   : > { %3187 = vmatprep.subr.mxu0 %v4299_v33  ;;  %3235 = vmatprep.subr.mxu1 %v4212_v31 }
 0x146   : > { %3188 = vmatpush3.msra.mxu0 %v4299_v33  ;;  %3236 = vmatpush3.msra.mxu1 %v4212_v31  ;;  %v5338_v33 = vand.u32 4294901760, %v4290_v28 }
 0x147   : > { %3189 = vmatprep.subr.mxu0 %v4352_v59  ;;  %3237 = vmatprep.subr.mxu1 %v4232_v20 }
 0x148   : > { %3104 = vmatprep.mubr.f32.mxu0 %v957_v53  ;;  %3154 = vmatprep.mubr.f32.mxu1 %v4430_v41 }
 0x149   : > { %3190 = vmatpush3.msra.mxu0 %v4352_v59  ;;  %3238 = vmatpush3.msra.mxu1 %v4232_v20  ;;  %v5339_v59 = vld [vmem:[#allocation8_spill] sm:$0xff] }
 0x14a   : > { %3105 = vmatmul.mubr.f32.gmra.mxu0 %v967_v16  ;;  %3155 = vmatmul.mubr.f32.gmra.mxu1 %v4438_v8 }
 0x14b   : > { %3191 = vmatprep.subr.mxu0 %v4325_v1  ;;  %3239 = vmatprep.subr.mxu1 %v4221_v40 }
 0x14c   : > { %3192 = vmatpush3.msra.mxu0 %v4325_v1  ;;  %3240 = vmatpush3.msra.mxu1 %v4221_v40  ;;  %v5343_v1 = vld [vmem:[#allocation10_spill] sm:$0xff] }
 0x14d   : > { %3193 = vmatprep.subr.mxu0 %v4384_v0  ;;  %3241 = vmatprep.subr.mxu1 %v4260_v47 }
 0x14e   : > { %3157 = vmatprep.mubr.f32.mxu1 %v4462_v52  ;;  %3194 = vmatpush3.msra.mxu0 %v4384_v0  ;;  %v5335_v0 = vld [vmem:[#allocation7_spill] sm:$0xff] }
 0x14f   : > { %3195 = vmatprep.mubr.f32.mxu0 %v4043_v51  ;;  %3242 = vmatpush3.msra.mxu1 %v4260_v47 }
 0x150   : > { %3158 = vmatmul.mubr.f32.gmra.mxu1 %v4471_v54  ;;  %3196 = vmatmul.mubr.f32.vlgmr.msra.gmra.mxu0 %v4290_v28  ;;  %v5342_v28 = vand.u32 4294901760, %v4317_v63 }
 0x151   : > { %3243 = vmatprep.subr.mxu1 %v4287_v27  ;;  %3275 = vmatprep.subr.mxu0 %v4121_v2 }
 0x152   : > { %3244 = vmatpush3.msra.mxu1 %v4287_v27  ;;  %3276 = vmatpush3.msra.mxu0 %v4121_v2  ;;  %v5334_v2 = vld [vmem:[#allocation20_spill] sm:$0xff] }
 0x153   : > { %3245 = vmatprep.subr.mxu1 %v4333_v32  ;;  %3277 = vmatprep.subr.mxu0 %v4114_v57 }
 0x154   : > { %3160 = vmatprep.mubr.f32.mxu1 %v4496_v43  ;;  %3198 = vmatprep.mubr.f32.mxu0 %v4302_v37 }
 0x155   : > { %3246 = vmatpush3.msra.mxu1 %v4333_v32  ;;  %3278 = vmatpush3.msra.mxu0 %v4114_v57  ;;  %v5337_v57 = vand.u32 4294901760, %v4043_v51  ;;  %v5341_v51 = vand.u32 4294901760, %v4302_v37  ;;  %v5346_v37 = vand.u32 4294901760, %v4346_v30 }
 0x156   : > { %3161 = vmatmul.mubr.f32.gmra.mxu1 %v4505_v29  ;;  %3199 = vmatmul.mubr.f32.gmra.mxu0 %v4317_v63  ;;  %v5347_v63 = vld [vmem:[#allocation12_spill] sm:$0xff] }
 0x157   : > { %3247 = vmatprep.subr.mxu1 %v4304_v42  ;;  %3279 = vmatprep.subr.mxu0 %v4152_v22 }
 0x158   : > { %3248 = vmatpush3.msra.mxu1 %v4304_v42  ;;  %3280 = vmatpush3.msra.mxu0 %v4152_v22  ;;  %v5340_v22 = vld [vmem:[#allocation9_spill] sm:$0xff] }
 0x159   : > { %3249 = vmatprep.subr.mxu1 %v5334_v2  ;;  %3281 = vmatprep.subr.mxu0 %v5335_v0 }
 0x15a   : > { %3201 = vmatprep.mubr.f32.mxu0 %v5336_v3  ;;  %3250 = vmatpush3.msra.mxu1 %v5334_v2 }
 0x15b   : > { %3251 = vmatprep.mubr.f32.mxu1 %v5337_v57  ;;  %3282 = vmatpush3.msra.mxu0 %v5335_v0 }
 0x15c   : > { %3202 = vmatmul.mubr.f32.gmra.mxu0 %v4346_v30  ;;  %3252 = vmatmul.mubr.f32.vlgmr.msra.gmra.mxu1 %v5338_v33  ;;  %v5350_v30 = vand.u32 4294901760, %v4394_v23 }
 0x15d   : > { %3283 = vmatprep.subr.mxu0 %v5339_v59  ;;  %3331 = vmatprep.subr.mxu1 %v4107_v48 }
 0x15e   : > { %3284 = vmatpush3.msra.mxu0 %v5339_v59  ;;  %3332 = vmatpush3.msra.mxu1 %v4107_v48  ;;  %v5344_v48 = vld [vmem:[#allocation11_spill] sm:$0xff] }
 0x15f   : > { %3285 = vmatprep.subr.mxu0 %v5340_v22  ;;  %3333 = vmatprep.subr.mxu1 %v4096_v38 }
 0x160   : > { %3204 = vmatprep.mubr.f32.mxu0 %v4376_v55  ;;  %3254 = vmatprep.mubr.f32.mxu1 %v5341_v51 }
 0x161   : > { %3286 = vmatpush3.msra.mxu0 %v5340_v22  ;;  %3334 = vmatpush3.msra.mxu1 %v4096_v38  ;;  %v5345_v38 = vand.u32 4294901760, %v5336_v3 }
 0x162   : > { %3205 = vmatmul.mubr.f32.gmra.mxu0 %v4394_v23  ;;  %3255 = vmatmul.mubr.f32.gmra.mxu1 %v5342_v28  ;;  %v5354_v23 = vand.u32 4294901760, %v4428_v21 }
 0x163   : > { %3287 = vmatprep.subr.mxu0 %v5343_v1  ;;  %3335 = vmatprep.subr.mxu1 %v4131_v11 }
 0x164   : > { %3288 = vmatpush3.msra.mxu0 %v5343_v1  ;;  %3336 = vmatpush3.msra.mxu1 %v4131_v11  ;;  %v5348_v11 = vld [vmem:[#allocation14_spill] sm:$0xff] }
 0x165   : > { %3289 = vmatprep.subr.mxu0 %v5344_v48  ;;  %3337 = vmatprep.subr.mxu1 %v4117_v61 }
 0x166   : > { %3207 = vmatprep.mubr.f32.mxu0 %v4418_v25  ;;  %3257 = vmatprep.mubr.f32.mxu1 %v5345_v38 }
 0x167   : > { %3290 = vmatpush3.msra.mxu0 %v5344_v48  ;;  %3338 = vmatpush3.msra.mxu1 %v4117_v61  ;;  %v5349_v61 = vand.u32 4294901760, %v4376_v55  ;;  %v5355_v55 = vld [vmem:[#allocation17_spill] sm:$0xff] }
 0x168   : > { %3208 = vmatmul.mubr.f32.gmra.mxu0 %v4428_v21  ;;  %3258 = vmatmul.mubr.f32.gmra.mxu1 %v5346_v37 }
 0x169   : > { %3291 = vmatprep.subr.mxu0 %v5347_v63  ;;  %3339 = vmatprep.subr.mxu1 %v4133_v13 }
 0x16a   : > { %3292 = vmatpush3.msra.mxu0 %v5347_v63  ;;  %3340 = vmatpush3.msra.mxu1 %v4133_v13  ;;  %v5352_v13 = vld [vmem:[#allocation15_spill] sm:$0xff] }
 0x16b   : > { %3293 = vmatprep.subr.mxu0 %v5348_v11  ;;  %3341 = vmatprep.subr.mxu1 %v4169_v36 }
 0x16c   : > { %3210 = vmatprep.mubr.f32.mxu0 %v4447_v62  ;;  %3260 = vmatprep.mubr.f32.mxu1 %v5349_v61 }
 0x16d   : > { %3294 = vmatpush3.msra.mxu0 %v5348_v11  ;;  %3342 = vmatpush3.msra.mxu1 %v4169_v36  ;;  %v5353_v36 = vand.u32 4294901760, %v4418_v25  ;;  %v5358_v25 = vld [vmem:[#allocation19_spill] sm:$0xff] }
 0x16e   : > { %3211 = vmatmul.mubr.f32.gmra.mxu0 %v4460_v56  ;;  %3261 = vmatmul.mubr.f32.gmra.mxu1 %v5350_v30 }
 0x16f   : > { %3295 = vmatprep.subr.mxu0 %v5351_v35  ;;  %3343 = vmatprep.subr.mxu1 %v4172_v39 }
 0x170   : > { %3296 = vmatpush3.msra.mxu0 %v5351_v35  ;;  %3344 = vmatpush3.msra.mxu1 %v4172_v39  ;;  %v5356_v39 = vld [vmem:[#allocation21_spill] sm:$0xff] }
 0x171   : > { %3297 = vmatprep.subr.mxu0 %v5352_v13  ;;  %3345 = vmatprep.subr.mxu1 %v4200_v17 }
 0x172   : > { %3213 = vmatprep.mubr.f32.mxu0 %v4481_v18  ;;  %3263 = vmatprep.mubr.f32.mxu1 %v5353_v36 }
 0x173   : > { %3298 = vmatpush3.msra.mxu0 %v5352_v13  ;;  %3346 = vmatpush3.msra.mxu1 %v4200_v17  ;;  %v5357_v17 = vand.u32 4294901760, %v4447_v62 }
 0x174   : > { %3214 = vmatmul.mubr.f32.gmra.mxu0 %v4494_v34  ;;  %3264 = vmatmul.mubr.f32.gmra.mxu1 %v5354_v23 }
 0x175   : > { %3299 = vmatprep.subr.mxu0 %v5355_v55  ;;  %3347 = vmatprep.subr.mxu1 %v4212_v31 }
 0x176   : > { %3300 = vmatpush3.msra.mxu0 %v5355_v55  ;;  %3348 = vmatpush3.msra.mxu1 %v4212_v31  ;;  %v5359_v31 = vld [vmem:[#allocation22_spill] sm:$0xff] }
 0x177   : > { %3301 = vmatprep.subr.mxu0 %v5356_v39  ;;  %3349 = vmatprep.subr.mxu1 %v4232_v20 }
 0x178   : > { %3216 = vmatprep.mubr.f32.mxu0 %v4512_v45  ;;  %3266 = vmatprep.mubr.f32.mxu1 %v5357_v17 }
 0x179   : > { %3302 = vmatpush3.msra.mxu0 %v5356_v39  ;;  %3350 = vmatpush3.msra.mxu1 %v4232_v20  ;;  %v5360_v20 = vld [vmem:[#allocation6_spill] sm:$0xff] }
 0x17a   : > { %3217 = vmatmul.mubr.f32.gmra.mxu0 %v4522_v60  ;;  %3267 = vmatmul.mubr.f32.gmra.mxu1 %v925_v58 }
 0x17b   : > { %3303 = vmatprep.subr.mxu0 %v5358_v25  ;;  %3351 = vmatprep.subr.mxu1 %v4221_v40 }
 0x17c   : > { %3304 = vmatpush3.msra.mxu0 %v5358_v25  ;;  %3352 = vmatpush3.msra.mxu1 %v4221_v40  ;;  %v5361_v40 = vld [vmem:[#allocation16_spill] sm:$0xff] }
 0x17d   : > { %3305 = vmatprep.subr.mxu0 %v5359_v31  ;;  %3353 = vmatprep.subr.mxu1 %v4260_v47 }
 0x17e   : > { %3269 = vmatprep.mubr.f32.mxu1 %v935_v19  ;;  %3306 = vmatpush3.msra.mxu0 %v5359_v31 }
 0x17f   : > { %3307 = vmatprep.mubr.f32.mxu0 %v5360_v20  ;;  %3354 = vmatpush3.msra.mxu1 %v4260_v47 }
 0x180   : > { %3270 = vmatmul.mubr.f32.gmra.mxu1 %v945_v15  ;;  %3308 = vmatmul.mubr.f32.vlgmr.msra.gmra.mxu0 %v4280_v14 }
 0x181   : > { %3355 = vmatprep.subr.mxu1 %v4287_v27  ;;  %3272 = vmatprep.mubr.f32.mxu1 %v955_v7 }
 0x182   : > { %3356 = vmatpush3.msra.mxu1 %v4287_v27  ;;  %3310 = vmatprep.mubr.f32.mxu0 %v4282_v10 }
 0x183   : > { %3357 = vmatprep.subr.mxu1 %v4333_v32 }
 0x184   : > { %3358 = vmatpush3.msra.mxu1 %v4333_v32  ;;  %3311 = vmatmul.mubr.f32.gmra.mxu0 %v5361_v40 }
 0x185   : > { %3273 = vmatmul.mubr.f32.gmra.mxu1 %v965_v46  ;;  %3359 = vmatprep.subr.mxu1 %v4304_v42 }
 0x186   : > { %3360 = vmatpush3.msra.mxu1 %v4304_v42  ;;  %3313 = vmatprep.mubr.f32.mxu0 %v4313_v50 }
 0x187   : > { %3361 = vmatprep.subr.mxu1 %v5334_v2  ;;  %3363 = vmatprep.mubr.f32.mxu1 %v5360_v20 }
 0x188   : > { %3362 = vmatpush3.msra.mxu1 %v5334_v2  ;;  %3314 = vmatmul.mubr.f32.gmra.mxu0 %v4322_v4 }
 0x189   : > { %3364 = vmatmul.mubr.f32.vlgmr.msra.gmra.mxu1 %v4280_v14  ;;  %3316 = vmatprep.mubr.f32.mxu0 %v4348_v49 }
 0x18a   : > { %3366 = vmatprep.mubr.f32.mxu1 %v4282_v10 }
 0x18c   : > { %3317 = vmatmul.mubr.f32.gmra.mxu0 %v4359_v6 }
 0x18d   : > { %3367 = vmatmul.mubr.f32.gmra.mxu1 %v5361_v40  ;;  %3319 = vmatprep.mubr.f32.mxu0 %v4396_v12 }
 0x18e   : > { %3369 = vmatprep.mubr.f32.mxu1 %v4313_v50 }
 0x190   : > { %3320 = vmatmul.mubr.f32.gmra.mxu0 %v4407_v24 }
 0x191   : > { %3370 = vmatmul.mubr.f32.gmra.mxu1 %v4322_v4  ;;  %3322 = vmatprep.mubr.f32.mxu0 %v4430_v41 }
 0x192   : > { %3372 = vmatprep.mubr.f32.mxu1 %v4348_v49  ;;  %v4725_v49 = vpop.permute.xlu0 %729 }
 0x194   : > { %3323 = vmatmul.mubr.f32.gmra.mxu0 %v4438_v8 }
 0x195   : > { %3373 = vmatmul.mubr.f32.gmra.mxu1 %v4359_v6  ;;  %3325 = vmatprep.mubr.f32.mxu0 %v4462_v52 }
 0x196   : > { %3375 = vmatprep.mubr.f32.mxu1 %v4396_v12  ;;  %v4727_v12 = vpop.permute.xlu1 %724  ;;  %v4729_v47 = vpop.permute.xlu0 %719 }
 0x198   : > { %3326 = vmatmul.mubr.f32.gmra.mxu0 %v4471_v54 }
 0x199   : > { %3376 = vmatmul.mubr.f32.gmra.mxu1 %v4407_v24  ;;  %3328 = vmatprep.mubr.f32.mxu0 %v4496_v43 }
 0x19a   : > { %3378 = vmatprep.mubr.f32.mxu1 %v4430_v41  ;;  %v4731_v14 = vpop.permute.xlu1 %714  ;;  %v710_v10 = vpop.permute.xlu0 %709 }
 0x19c   : > { %3329 = vmatmul.mubr.f32.gmra.mxu0 %v4505_v29 }
 0x19d   : > { %3379 = vmatmul.mubr.f32.gmra.mxu1 %v4438_v8 }
 0x19e   : > { %3381 = vmatprep.mubr.f32.mxu1 %v4462_v52  ;;  %v705_v27 = vpop.permute.xlu1 %704  ;;  %v700_v42 = vpop.permute.xlu0 %699  ;;  %v5309_v52 = vmov 0.0  }
 0x19f   : > { %3387 = vmatprep.subr.mxu0 %v5309_v52  ;;  %3422 = vmatprep.subr.mxu1 %v5309_v52 }
 0x1a0   : > { %3419 = vmatprep.mubr.msk.f32.mxu0 %vm3788_vm0, %v5309_v52 }
 0x1a1   : > { %3382 = vmatmul.mubr.f32.gmra.mxu1 %v4471_v54 }
 0x1a2   : > { %3384 = vmatprep.mubr.f32.mxu1 %v4496_v43  ;;  %v695_v50 = vpop.permute.xlu1 %694  ;;  %v690_v6 = vpop.permute.xlu0 %689 }
 0x1a5   : > { %3385 = vmatmul.mubr.f32.gmra.mxu1 %v4505_v29 }
 0x1a6   : > { %v685_v4 = vpop.permute.xlu1 %684  ;;  %v680_v24 = vpop.permute.xlu0 %679  ;;  %3454 = vmatprep.mubr.msk.f32.mxu1 %vm3788_vm0, %v5309_v52 }
 0x1aa   : > { %v675_v32 = vpop.permute.xlu1 %674  ;;  %v670_v43 = vpop.permute.xlu0 %669 }
 0x1ae   : > { %v665_v41 = vpop.permute.xlu1 %664  ;;  %v660_v18 = vpop.permute.xlu0 %659 }
 0x1b2   : > { %v655_v62 = vpop.permute.xlu1 %654 }
 0x1e3   : > { %v3085_v21 = vpop.f32.mrf.mxu0 }
 0x1e4   : > { %v830_v56 = vadd.f32 %v3085_v21, %v660_v18 }
 0x1e5   : > { %v819_v29 = vpop.f32.mrf.mxu0 }
 0x1e6   : > { %v820_v34 = vadd.f32 %v819_v29, %v655_v62 }
 0x1e7   : > { %v3088_v58 = vpop.f32.mrf.mxu0 }
 0x1e8   : > { %v850_v44 = vadd.f32 %v3088_v58, %v670_v43 }
 0x1e9   : > { %v839_v8 = vpop.f32.mrf.mxu0 }
 0x1ea   : > { %v840_v9 = vadd.f32 %v839_v8, %v665_v41 }
 0x1ec   : > { %v3091_v45 = vpop.f32.mrf.mxu0  ;;  %v3141_v54 = vpop.f32.mrf.mxu1 }
 0x1ed   : > { %v1127_v19 = vadd.f32 %v3141_v54, %v830_v56  ;;  %v870_v0 = vadd.f32 %v3091_v45, %v680_v24 }
 0x1ee   : > { %v859_v15 = vpop.f32.mrf.mxu0  ;;  %v1120_v60 = vpop.f32.mrf.mxu1 }
 0x1ef   : > { %v1121_v7 = vadd.f32 %v1120_v60, %v820_v34  ;;  %v860_v33 = vadd.f32 %v859_v15, %v675_v32 }
 0x1f2   : > { %v3094_v46 = vpop.f32.mrf.mxu0  ;;  %v3144_v5 = vpop.f32.mrf.mxu1 }
 0x1f3   : > { %v1139_v26 = vadd.f32 %v3144_v5, %v850_v44  ;;  %v890_v1 = vadd.f32 %v3094_v46, %v690_v6 }
 0x1f4   : > { %v879_v53 = vpop.f32.mrf.mxu0  ;;  %v1132_v16 = vpop.f32.mrf.mxu1 }
 0x1f5   : > { %v1133_v2 = vadd.f32 %v1132_v16, %v840_v9  ;;  %v880_v37 = vadd.f32 %v879_v53, %v685_v4 }
 0x1f8   : > { %v3097_v3 = vpop.f32.mrf.mxu0  ;;  %v3147_v57 = vpop.f32.mrf.mxu1 }
 0x1f9   : > { %v1151_v59 = vadd.f32 %v3147_v57, %v870_v0  ;;  %v910_v35 = vadd.f32 %v3097_v3, %v700_v42 }
 0x1fa   : > { %v899_v22 = vpop.f32.mrf.mxu0  ;;  %v1144_v51 = vpop.f32.mrf.mxu1 }
 0x1fb   : > { %v1145_v28 = vadd.f32 %v1144_v51, %v860_v33  ;;  %v900_v23 = vadd.f32 %v899_v22, %v695_v50 }
 0x1fe   : > { %v3100_v48 = vpop.f32.mrf.mxu0  ;;  %v3150_v38 = vpop.f32.mrf.mxu1 }
 0x1ff   : > { %v4735_v63 = vadd.f32 %v3150_v38, %v890_v1  ;;  %v930_v31 = vadd.f32 %v3100_v48, %v710_v10 }
 0x200   : > { %v919_v11 = vpop.f32.mrf.mxu0  ;;  %v1156_v61 = vpop.f32.mrf.mxu1 }
 0x201   : > { %v4737_v30 = vadd.f32 %v1156_v61, %v880_v37  ;;  %v920_v6 = vadd.f32 %v919_v11, %v705_v27 }
 0x204   : > { %v3103_v13 = vpop.f32.mrf.mxu0  ;;  %v3153_v36 = vpop.f32.mrf.mxu1 }
 0x205   : > { %v4739_v55 = vadd.f32 %v3153_v36, %v910_v35  ;;  %v950_v50 = vadd.f32 %v3103_v13, %v4729_v47 }
 0x206   : > { %v939_v39 = vpop.f32.mrf.mxu0  ;;  %v1168_v17 = vpop.f32.mrf.mxu1 }
 0x207   : > { %v4741_v25 = vadd.f32 %v1168_v17, %v900_v23  ;;  %v940_v41 = vadd.f32 %v939_v39, %v4731_v14 }
 0x20a   : > { %v4743_v20 = vpop.f32.mrf.mxu0  ;;  %v3156_v40 = vpop.f32.mrf.mxu1 }
 0x20b   : > { %v4745_v4 = vadd.f32 %v3156_v40, %v930_v31 }
 0x20c   : > { %v4747_v24 = vpop.f32.mrf.mxu0  ;;  %v1180_v32 = vpop.f32.mrf.mxu1 }
 0x20d   : > { %v4749_v42 = vadd.f32 %v1180_v32, %v920_v6 }
 0x210   : > { %v3159_v21 = vpop.f32.mrf.mxu1  ;;  %v3197_v43 = vpop.f32.mrf.mxu0 }
 0x211   : > { %v4753_v29 = vadd.f32 %v3159_v21, %v950_v50  ;;  %v1322_v10 = vadd.f32 %v3197_v43, %v1127_v19 }
 0x212   : > { %v1192_v58 = vpop.f32.mrf.mxu1  ;;  %v1314_v8 = vpop.f32.mrf.mxu0 }
 0x213   : > { %v4755_v18 = vadd.f32 %v1192_v58, %v940_v41  ;;  %v1315_v27 = vadd.f32 %v1314_v8, %v1121_v7 }
 0x216   : > { %v4757_v62 = vpop.f32.mrf.mxu1  ;;  %v3200_v56 = vpop.f32.mrf.mxu0 }
 0x217   : > { %v1336_v45 = vadd.f32 %v3200_v56, %v1139_v26 }
 0x218   : > { %v4763_v47 = vpop.f32.mrf.mxu1  ;;  %v1328_v14 = vpop.f32.mrf.mxu0 }
 0x219   : > { %v1329_v54 = vadd.f32 %v1328_v14, %v1133_v2 }
 0x21c   : > { %v3203_v34 = vpop.f32.mrf.mxu0  ;;  %v3253_v19 = vpop.f32.mrf.mxu1 }
 0x21d   : > { %v1350_v15 = vadd.f32 %v3203_v34, %v1151_v59  ;;  %v4765_v60 = vadd.f32 %v3253_v19, %v1322_v10 }
 0x21e   : > { %v1342_v7 = vpop.f32.mrf.mxu0  ;;  %v1508_v44 = vpop.f32.mrf.mxu1 }
 0x21f   : > { %5362 = vst [vmem:[#allocation20_spill] sm:$0xff] %v4765_v60  ;;  %v1343_v46 = vadd.f32 %v1342_v7, %v1145_v28  ;;  %v4767_v5 = vadd.f32 %v1508_v44, %v1315_v27 }
 0x221   : > { %5363 = vst [vmem:[#allocation7_spill] sm:$0xff] %v4767_v5  ;;  %v960_v5 = vadd.f32 %v4747_v24, %v4727_v12 }
 0x222   : > { %v4769_v9 = vpop.f32.mrf.mxu0  ;;  %v3256_v26 = vpop.f32.mrf.mxu1 }
 0x223   : > { %v4771_v53 = vadd.f32 %v3256_v26, %v1336_v45  ;;  %v1364_v12 = vadd.f32 %v4769_v9, %v4735_v63 }
 0x224   : > { %v4773_v16 = vpop.f32.mrf.mxu0  ;;  %v1524_v0 = vpop.f32.mrf.mxu1 }
 0x225   : > { %v4775_v3 = vadd.f32 %v1524_v0, %v1329_v54 }
 0x227   : > { %5364 = vst [vmem:[#allocation18_spill] sm:$0xff] %v4775_v3 }
 0x228   : > { %v3209_v2 = vpop.f32.mrf.mxu0  ;;  %v3259_v57 = vpop.f32.mrf.mxu1 }
 0x229   : > { %v4777_v33 = vadd.f32 %v3259_v57, %v1350_v15 }
 0x22a   : > { %v4779_v59 = vpop.f32.mrf.mxu0  ;;  %v1540_v22 = vpop.f32.mrf.mxu1 }
 0x22b   : > { %v4781_v51 = vadd.f32 %v1540_v22, %v1343_v46 }
 0x22e   : > { %v3212_v28 = vpop.f32.mrf.mxu0  ;;  %v4783_v1 = vpop.f32.mrf.mxu1 }
 0x22f   : > { %v1392_v22 = vadd.f32 %v3212_v28, %v4745_v4  ;;  %v1205_v4 = vadd.f32 %v4763_v47, %v960_v5  ;;  %v1378_v28 = vadd.f32 %v3209_v2, %v4739_v55 }
 0x230   : > { %v1384_v48 = vpop.f32.mrf.mxu0  ;;  %v4785_v38 = vpop.f32.mrf.mxu1 }
 0x234   : > { %v3215_v37 = vpop.f32.mrf.mxu0  ;;  %v3265_v11 = vpop.f32.mrf.mxu1 }
 0x236   : > { %v1398_v61 = vpop.f32.mrf.mxu0  ;;  %v4787_v35 = vpop.f32.mrf.mxu1 }
 0x23a   : > { %v3218_v13 = vpop.f32.mrf.mxu0  ;;  %v3268_v36 = vpop.f32.mrf.mxu1 }
 0x23c   : > { %v1412_v23 = vpop.f32.mrf.mxu0  ;;  %v1588_v39 = vpop.f32.mrf.mxu1 }
 0x23d   : > { %v1413_v47 = vadd.f32 %v1412_v23, %v1205_v4  ;;  %v5380_v4 = vld [vmem:[#allocation7_spill] sm:$0xff] }
 0x240   : > { %v3271_v17 = vpop.f32.mrf.mxu1  ;;  %v4789_v31 = vpop.f32.mrf.mxu0 }
 0x241   : > { %5365 = vst [vmem:[#allocation8_spill] sm:$0xff] %v4789_v31  ;;  %v1597_v31 = vadd.f32 %v3268_v36, %v1392_v22 }
 0x242   : > { %v1604_v40 = vpop.f32.mrf.mxu1  ;;  %v4791_v6 = vpop.f32.mrf.mxu0 }
 0x243   : > { %5366 = vst [vmem:[#allocation9_spill] sm:$0xff] %v4791_v6  ;;  %v1406_v6 = vadd.f32 %v3215_v37, %v4753_v29  ;;  %v1581_v37 = vadd.f32 %v3265_v11, %v1378_v28 }
 0x244   : > { %v4793_v32 = vpop.f32.mrf.mxu0 }
 0x245   : > { %v3274_v50 = vpop.f32.mrf.mxu1  ;;  %v1613_v3 = vadd.f32 %v3271_v17, %v1406_v6 }
 0x246   : > { %v4795_v21 = vpop.f32.mrf.mxu0 }
 0x247   : > { %5367 = vst [vmem:[#allocation10_spill] sm:$0xff] %v4795_v21  ;;  %v1620_v43 = vpop.f32.mrf.mxu1  ;;  %v1399_v21 = vadd.f32 %v1398_v61, %v4755_v18 }
 0x248   : > { %v4797_v41 = vpop.f32.mrf.mxu0 }
 0x249   : > { %v4799_v10 = vpop.f32.mrf.mxu1 }
 0x24a   : > { %5368 = vst [vmem:[#allocation11_spill] sm:$0xff] %v4799_v10  ;;  %v4801_v58 = vpop.f32.mrf.mxu0  ;;  %v970_v10 = vadd.f32 %v4743_v20, %v4725_v49  ;;  %v5381_v28 = vld [vmem:[#allocation9_spill] sm:$0xff] }
 0x24b   : > { %v4803_v8 = vpop.f32.mrf.mxu1 }
 0x24c   : > { %5369 = vst [vmem:[#allocation12_spill] sm:$0xff] %v4803_v8  ;;  %v4805_v27 = vpop.f32.mrf.mxu0 }
 0x24d   : > { %v4807_v56 = vpop.f32.mrf.mxu1 }
 0x24e   : > { %5370 = vst [vmem:[#allocation14_spill] sm:$0xff] %v4807_v56  ;;  %v4809_v45 = vpop.f32.mrf.mxu0  ;;  %v1211_v56 = vadd.f32 %v4757_v62, %v970_v10  ;;  %v1371_v62 = vadd.f32 %v4779_v59, %v4741_v25 }
 0x24f   : > { %v4811_v14 = vpop.f32.mrf.mxu1 }
 0x250   : > { %5371 = vst [vmem:[#allocation13_spill] sm:$0xff] %v4811_v14  ;;  %v3321_v54 = vpop.f32.mrf.mxu0  ;;  %v1385_v14 = vadd.f32 %v1384_v48, %v4749_v42  ;;  %v1420_v24 = vadd.f32 %v3218_v13, %v1211_v56  ;;  %v1605_v42 = vadd.f32 %v1604_v40, %v1399_v21  ;;  %v1573_v17 = vadd.f32 %v4787_v35, %v1371_v62 }
 0x251   : > { %v4813_v34 = vpop.f32.mrf.mxu1  ;;  %v1802_v63 = vadd.f32 %v3321_v54, %v1581_v37 }
 0x252   : > { %v1795_v19 = vpop.f32.mrf.mxu0  ;;  %v1629_v5 = vadd.f32 %v3274_v50, %v1420_v24 }
 0x253   : > { %v4815_v15 = vpop.f32.mrf.mxu1  ;;  %v1796_v59 = vadd.f32 %v1795_v19, %v1573_v17  ;;  %v5374_v19 = vld [vmem:[#allocation18_spill] sm:$0xff]  ;;  %v5383_v37 = vld [vmem:[#allocation12_spill] sm:$0xff] }
 0x254   : > { %5372 = vst [vmem:[#allocation15_spill] sm:$0xff] %v4815_v15  ;;  %v3324_v7 = vpop.f32.mrf.mxu0  ;;  %v1589_v15 = vadd.f32 %v1588_v39, %v1385_v14  ;;  %v1357_v39 = vadd.f32 %v4773_v16, %v4737_v30 }
 0x255   : > { %v3374_v44 = vpop.f32.mrf.mxu1  ;;  %v1814_v49 = vadd.f32 %v3324_v7, %v1597_v31  ;;  %v1621_v31 = vadd.f32 %v1620_v43, %v1413_v47 }
 0x256   : > { %v1807_v46 = vpop.f32.mrf.mxu0  ;;  %v1557_v30 = vadd.f32 %v4785_v38, %v1357_v39  ;;  %v1772_v38 = vadd.f32 %v4801_v58, %v4781_v51  ;;  %v5377_v58 = vld [vmem:[#allocation20_spill] sm:$0xff] }
 0x257   : > { %v4817_v26 = vpop.f32.mrf.mxu1  ;;  %v1808_v18 = vadd.f32 %v1807_v46, %v1589_v15  ;;  %v5375_v15 = vld [vmem:[#allocation10_spill] sm:$0xff] }
 0x258   : > { %v3327_v0 = vpop.f32.mrf.mxu0  ;;  %v1784_v43 = vadd.f32 %v4809_v45, %v1557_v30  ;;  %v1760_v7 = vadd.f32 %v5375_v15, %v5374_v19 }
 0x259   : > { %v3377_v57 = vpop.f32.mrf.mxu1  ;;  %v1826_v48 = vadd.f32 %v3327_v0, %v1613_v3  ;;  %v5379_v0 = vld [vmem:[#allocation13_spill] sm:$0xff] }
 0x25a   : > { %v1819_v52 = vpop.f32.mrf.mxu0  ;;  %v1979_v11 = vadd.f32 %v3377_v57, %v1802_v63  ;;  %v1961_v56 = vadd.f32 %v4817_v26, %v1784_v43  ;;  %v1937_v57 = vadd.f32 %v5379_v0, %v1760_v7 }
 0x25b   : > { %v1972_v8 = vpop.f32.mrf.mxu1  ;;  %v1820_v55 = vadd.f32 %v1819_v52, %v1605_v42  ;;  %v5373_v14 = vld [vmem:[#allocation15_spill] sm:$0xff] }
 0x25c   : > { %v3330_v20 = vpop.f32.mrf.mxu0  ;;  %v1973_v35 = vadd.f32 %v1972_v8, %v1796_v59  ;;  %v1949_v45 = vadd.f32 %v5373_v14, %v1772_v38 }
 0x25d   : > { %v3380_v60 = vpop.f32.mrf.mxu1  ;;  %v1838_v40 = vadd.f32 %v3330_v20, %v1629_v5  ;;  %v5382_v20 = vld [vmem:[#allocation11_spill] sm:$0xff] }
 0x25e   : > { %v1991_v61 = vadd.f32 %v3380_v60, %v1814_v49  ;;  %v1831_v9 = vpop.f32.mrf.mxu0  ;;  %v1565_v60 = vadd.f32 %v4783_v1, %v1364_v12  ;;  %v1778_v1 = vadd.f32 %v4797_v41, %v4777_v33  ;;  %v5376_v33 = vld [vmem:[#allocation14_spill] sm:$0xff]  ;;  %v1748_v49 = vadd.f32 %v5381_v28, %v5380_v4 }
 0x25f   : > { %v1984_v29 = vpop.f32.mrf.mxu1  ;;  %v1832_v23 = vadd.f32 %v1831_v9, %v1621_v31 }
 0x260   : > { %v1985_v13 = vadd.f32 %v1984_v29, %v1808_v18  ;;  %v1790_v16 = vadd.f32 %v4805_v27, %v1565_v60  ;;  %v1955_v8 = vadd.f32 %v4813_v34, %v1778_v1  ;;  %v1766_v27 = vadd.f32 %v4793_v32, %v4771_v53  ;;  %v5378_v34 = vld [vmem:[#allocation8_spill] sm:$0xff] }
 0x261   : > { %v3383_v36 = vpop.f32.mrf.mxu1  ;;  %v1754_v26 = vadd.f32 %v5378_v34, %v5377_v58  ;;  %v1925_v18 = vadd.f32 %v5383_v37, %v1748_v49 }
 0x262   : > { %v2003_v2 = vadd.f32 %v3383_v36, %v1826_v48  ;;  %v1967_v10 = vadd.f32 %v3374_v44, %v1790_v16  ;;  %v1943_v41 = vadd.f32 %v5376_v33, %v1766_v27 }
 0x263   : > { %v1996_v3 = vpop.f32.mrf.mxu1  ;;  %v1931_v29 = vadd.f32 %v5382_v20, %v1754_v26 }
 0x264   : > { %3691 = vtanh.f32 %v2003_v2  ;;  %v1997_v25 = vadd.f32 %v1996_v3, %v1820_v55  ;;  %v5384_v2 = vmov 0.0  }
 0x265   : > { %3693 = vtanh.f32 %v1991_v61  ;;  %v3386_v52 = vpop.f32.mrf.mxu1 }
 0x266   : > { %3695 = vtanh.f32 %v1997_v25  ;;  %v2015_v6 = vadd.f32 %v3386_v52, %v1838_v40 }
 0x267   : > { %3697 = vtanh.f32 %v1985_v13  ;;  %v2008_v50 = vpop.f32.mrf.mxu1 }
 0x268   : > { %3699 = vtanh.f32 %v2015_v6  ;;  %v2009_v21 = vadd.f32 %v2008_v50, %v1832_v23 }
 0x269   : > { %3701 = vtanh.f32 %v1979_v11 }
 0x26a   : > { %3703 = vtanh.f32 %v2009_v21 }
 0x26b   : > { %3705 = vtanh.f32 %v1973_v35 }
 0x26c   : > { %3707 = vtanh.f32 %v1967_v10 }
 0x26d   : > { %3709 = vtanh.f32 %v1961_v56 }
 0x26e   : > { %3711 = vtanh.f32 %v1955_v8  ;;  %v2034_v8 = vld [vmem:[%s5265_s5] sm:$0x1] }
 0x26f   : > { %3713 = vtanh.f32 %v1949_v45  ;;  %v4950_v33 = vand.u32 4294901760, %v2034_v8 }
 0x270   : > { %3715 = vtanh.f32 %v1943_v41 }
 0x271   : > { %v3692_v54 = vpop.eup %3691  ;;  %3717 = vtanh.f32 %v1937_v57  ;;  %v4977_v49 = vsub.f32 %v2034_v8, %v4950_v33 }
 0x272   : > { %v3694_v44 = vpop.eup %3693  ;;  %v4853_v46 = vand.u32 4294901760, %v3692_v54  ;;  %3719 = vtanh.f32 %v1931_v29 }
 0x273   : > { %v3696_v51 = vpop.eup %3695  ;;  %v4865_v42 = vand.u32 4294901760, %v3694_v44  ;;  %3721 = vtanh.f32 %v1925_v18 }
 0x274   : > { %v3698_v53 = vpop.eup %3697  ;;  %v4858_v32 = vand.u32 4294901760, %v3696_v51  ;;  %v4868_v48 = vsub.f32 %v3692_v54, %v4853_v46 }
 0x275   : > { %v3700_v22 = vpop.eup %3699  ;;  %v4877_v5 = vand.u32 4294901760, %v3698_v53  ;;  %v4892_v3 = vsub.f32 %v3694_v44, %v4865_v42 }
 0x276   : > { %v3702_v12 = vpop.eup %3701  ;;  %v4863_v24 = vand.u32 4294901760, %v3700_v22  ;;  %v4880_v55 = vsub.f32 %v3696_v51, %v4858_v32  ;;  %v2145_v13 = vand.u32 4294901760, %v4868_v48 }
 0x277   : > { %v3704_v62 = vpop.eup %3703  ;;  %v4883_v39 = vand.u32 4294901760, %v3702_v12  ;;  %v4904_v11 = vsub.f32 %v3698_v53, %v4877_v5  ;;  %v2159_v50 = vand.u32 4294901760, %v4892_v3 }
 0x278   : > { %v3706_v61 = vpop.eup %3705  ;;  %3388 = vmatpush3.msra.mxu0 %v4863_v24  ;;  %v4872_v36 = vand.u32 4294901760, %v3704_v62  ;;  %v4875_v47 = vsub.f32 %v3700_v22, %v4863_v24  ;;  %v2152_v59 = vand.u32 4294901760, %v4880_v55  ;;  %v2146_v35 = vsub.f32 %v4868_v48, %v2145_v13 }
 0x279   : > { %3389 = vmatprep.subr.mxu0 %v5384_v2  ;;  %v3708_v17 = vpop.eup %3707  ;;  %v4895_v31 = vand.u32 4294901760, %v3706_v61  ;;  %v4910_v23 = vsub.f32 %v3702_v12, %v4883_v39  ;;  %v2166_v56 = vand.u32 4294901760, %v4904_v11  ;;  %v2160_v54 = vsub.f32 %v4892_v3, %v2159_v50 }
 0x27a   : > { %3390 = vmatpush3.msra.mxu0 %v4872_v36  ;;  %v2131_v63 = vand.u32 4294901760, %v4875_v47  ;;  %v4888_v9 = vsub.f32 %v3704_v62, %v4872_v36  ;;  %v3710_v40 = vpop.eup %3709  ;;  %v4907_v52 = vand.u32 4294901760, %v3708_v17  ;;  %v2153_v1 = vsub.f32 %v4880_v55, %v2152_v59 }
 0x27b   : > { %3391 = vmatprep.subr.mxu0 %v5384_v2  ;;  %v3712_v6 = vpop.eup %3711  ;;  %v4921_v21 = vand.u32 4294901760, %v3710_v40  ;;  %v4929_v38 = vsub.f32 %v3706_v61, %v4895_v31  ;;  %v2147_v45 = vand.u32 4294901760, %v2146_v35  ;;  %v2173_v19 = vand.u32 4294901760, %v4910_v23 }
 0x27c   : > { %3392 = vmatpush3.msra.mxu0 %v4853_v46  ;;  %v2132_v25 = vsub.f32 %v4875_v47, %v2131_v63  ;;  %v2138_v60 = vand.u32 4294901760, %v4888_v9  ;;  %v3714_v43 = vpop.eup %3713  ;;  %v4936_v27 = vand.u32 4294901760, %v3712_v6  ;;  %v4944_v15 = vsub.f32 %v3708_v17, %v4907_v52 }
 0x27d   : > { %3393 = vmatprep.subr.mxu0 %v5384_v2  ;;  %v3716_v14 = vpop.eup %3715  ;;  %v4948_v7 = vand.u32 4294901760, %v3714_v43  ;;  %v2154_v44 = vand.u32 4294901760, %v2153_v1  ;;  %v2167_v51 = vsub.f32 %v4904_v11, %v2166_v56  ;;  %v2180_v58 = vand.u32 4294901760, %v4929_v38 }
 0x27e   : > { %3394 = vmatpush3.msra.mxu0 %v4858_v32  ;;  %v2133_v30 = vand.u32 4294901760, %v2132_v25  ;;  %v2139_v16 = vsub.f32 %v4888_v9, %v2138_v60  ;;  %v3718_v41 = vpop.eup %3717  ;;  %v4958_v34 = vsub.f32 %v3710_v40, %v4921_v21  ;;  %v4962_v26 = vand.u32 4294901760, %v3716_v14 }
 0x27f   : > { %3395 = vmatprep.subr.mxu0 %v5384_v2  ;;  %v3720_v0 = vpop.eup %3719  ;;  %v2161_v57 = vand.u32 4294901760, %v2160_v54  ;;  %v2174_v53 = vsub.f32 %v4910_v23, %v2173_v19  ;;  %v2187_v22 = vand.u32 4294901760, %v4944_v15  ;;  %v4970_v4 = vsub.f32 %v3712_v6, %v4936_v27 }
 0x280   : > { %3396 = vmatpush3.msra.mxu0 %v4865_v42  ;;  %3423 = vmatpush3.msra.mxu1 %v2133_v30  ;;  %v2140_v10 = vand.u32 4294901760, %v2139_v16  ;;  %v4974_v28 = vand.u32 4294901760, %v3718_v41  ;;  %v3722_v20 = vpop.eup %3721  ;;  %v2168_v29 = vand.u32 4294901760, %v2167_v51  ;;  %v2181_v12 = vsub.f32 %v4929_v38, %v2180_v58 }
 0x281   : > { %3397 = vmatprep.subr.mxu0 %v5384_v2  ;;  %3424 = vmatprep.subr.mxu1 %v5384_v2  ;;  %v2194_v62 = vand.u32 4294901760, %v4958_v34  ;;  %v4985_v37 = vsub.f32 %v3714_v43, %v4948_v7  ;;  %v4989_v18 = vand.u32 4294901760, %v3720_v0  ;;  %v2175_v61 = vand.u32 4294901760, %v2174_v53 }
 0x282   : > { %3398 = vmatpush3.msra.mxu0 %v4877_v5  ;;  %3425 = vmatpush3.msra.mxu1 %v2140_v10  ;;  %v2188_v17 = vsub.f32 %v4944_v15, %v2187_v22  ;;  %v2201_v40 = vand.u32 4294901760, %v4970_v4  ;;  %v4997_v25 = vsub.f32 %v3716_v14, %v4962_v26  ;;  %v5001_v6 = vand.u32 4294901760, %v3722_v20 }
 0x283   : > { %3399 = vmatprep.subr.mxu0 %v5384_v2  ;;  %3426 = vmatprep.subr.mxu1 %v5384_v2  ;;  %v2120_v30 = vand.u32 4294901760, %v4977_v49  ;;  %v2182_v16 = vand.u32 4294901760, %v2181_v12  ;;  %v2195_v35 = vsub.f32 %v4958_v34, %v2194_v62  ;;  %v2208_v43 = vand.u32 4294901760, %v4985_v37 }
 0x284   : > { %3400 = vmatpush3.msra.mxu0 %v4883_v39  ;;  %3427 = vmatpush3.msra.mxu1 %v2147_v45  ;;  %v5010_v10 = vsub.f32 %v3718_v41, %v4974_v28  ;;  %v2189_v1 = vand.u32 4294901760, %v2188_v17  ;;  %v2202_v8 = vsub.f32 %v4970_v4, %v2201_v40  ;;  %v2215_v14 = vand.u32 4294901760, %v4997_v25 }
 0x285   : > { %3401 = vmatprep.subr.mxu0 %v5384_v2  ;;  %3428 = vmatprep.subr.mxu1 %v5384_v2  ;;  %v5020_v45 = vsub.f32 %v3720_v0, %v4989_v18  ;;  %v2121_v54 = vsub.f32 %v4977_v49, %v2120_v30  ;;  %v2196_v41 = vand.u32 4294901760, %v2195_v35  ;;  %v5033_v0 = vsub.f32 %v3722_v20, %v5001_v6 }
 0x286   : > { %3402 = vmatpush3.msra.mxu0 %v4895_v31  ;;  %3429 = vmatpush3.msra.mxu1 %v2154_v44  ;;  %v2209_v44 = vsub.f32 %v4985_v37, %v2208_v43  ;;  %v2222_v51 = vand.u32 4294901760, %v5010_v10  ;;  %v2216_v53 = vsub.f32 %v4997_v25, %v2215_v14 }
 0x287   : > { %3403 = vmatprep.subr.mxu0 %v5384_v2  ;;  %3430 = vmatprep.subr.mxu1 %v5384_v2  ;;  %v2122_v12 = vand.u32 4294901760, %v2121_v54  ;;  %v2236_v17 = vand.u32 4294901760, %v5033_v0 }
 0x288   : > { %3404 = vmatpush3.msra.mxu0 %v4907_v52  ;;  %3431 = vmatpush3.msra.mxu1 %v2161_v57  ;;  %v2203_v57 = vand.u32 4294901760, %v2202_v8  ;;  %v2210_v20 = vand.u32 4294901760, %v2209_v44 }
 0x289   : > { %3405 = vmatprep.subr.mxu0 %v5384_v2  ;;  %3432 = vmatprep.subr.mxu1 %v5384_v2  ;;  %v2237_v8 = vsub.f32 %v5033_v0, %v2236_v17 }
 0x28a   : > { %3406 = vmatpush3.msra.mxu0 %v4921_v21  ;;  %3433 = vmatpush3.msra.mxu1 %v2168_v29  ;;  %v2229_v29 = vand.u32 4294901760, %v5020_v45 }
 0x28b   : > { %3407 = vmatprep.subr.mxu0 %v5384_v2  ;;  %3434 = vmatprep.subr.mxu1 %v5384_v2 }
 0x28c   : > { %3408 = vmatpush3.msra.mxu0 %v4936_v27  ;;  %3435 = vmatpush3.msra.mxu1 %v2175_v61  ;;  %v2223_v61 = vsub.f32 %v5010_v10, %v2222_v51  ;;  %v2230_v35 = vsub.f32 %v5020_v45, %v2229_v29 }
 0x28d   : > { %3409 = vmatprep.subr.mxu0 %v5384_v2  ;;  %3436 = vmatprep.subr.mxu1 %v5384_v2 }
 0x28e   : > { %3410 = vmatpush3.msra.mxu0 %v4948_v7  ;;  %3437 = vmatpush3.msra.mxu1 %v2182_v16  ;;  %v2217_v16 = vand.u32 4294901760, %v2216_v53  ;;  %v2231_v54 = vand.u32 4294901760, %v2230_v35 }
 0x28f   : > { %3411 = vmatprep.subr.mxu0 %v5384_v2  ;;  %3438 = vmatprep.subr.mxu1 %v5384_v2 }
 0x290   : > { %3412 = vmatpush3.msra.mxu0 %v4962_v26  ;;  %3439 = vmatpush3.msra.mxu1 %v2189_v1  ;;  %v2224_v1 = vand.u32 4294901760, %v2223_v61 }
 0x291   : > { %3413 = vmatprep.subr.mxu0 %v5384_v2  ;;  %3440 = vmatprep.subr.mxu1 %v5384_v2 }
 0x292   : > { %3414 = vmatpush3.msra.mxu0 %v4974_v28  ;;  %3441 = vmatpush3.msra.mxu1 %v2196_v41  ;;  %v2238_v41 = vand.u32 4294901760, %v2237_v8 }
 0x293   : > { %3415 = vmatprep.subr.mxu0 %v5384_v2  ;;  %3442 = vmatprep.subr.mxu1 %v5384_v2 }
 0x294   : > { %3416 = vmatpush3.msra.mxu0 %v4989_v18  ;;  %3443 = vmatpush3.msra.mxu1 %v2203_v57 }
 0x295   : > { %3417 = vmatprep.subr.mxu0 %v5384_v2  ;;  %3444 = vmatprep.subr.mxu1 %v5384_v2 }
 0x296   : > { %3418 = vmatpush3.msra.mxu0 %v5001_v6  ;;  %3445 = vmatpush3.msra.mxu1 %v2210_v20 }
 0x297   : > { %3446 = vmatprep.subr.mxu1 %v5384_v2  ;;  %3457 = vmatprep.subr.mxu0 %v5384_v2 }
 0x298   : > { %3420 = vmatmul.mubr.f32.vlgmr.msra.gmra.mxu0 %v2122_v12  ;;  %3447 = vmatpush3.msra.mxu1 %v2217_v16 }
 0x299   : > { %3458 = vmatpush3.msra.mxu0 %v4875_v47  ;;  %3448 = vmatprep.subr.mxu1 %v5384_v2 }
 0x29a   : > { %3459 = vmatprep.subr.mxu0 %v5384_v2  ;;  %3449 = vmatpush3.msra.mxu1 %v2224_v1 }
 0x29b   : > { %3460 = vmatpush3.msra.mxu0 %v4888_v9  ;;  %3450 = vmatprep.subr.mxu1 %v5384_v2 }
 0x29c   : > { %3461 = vmatprep.subr.mxu0 %v5384_v2  ;;  %3451 = vmatpush3.msra.mxu1 %v2231_v54 }
 0x29d   : > { %3462 = vmatpush3.msra.mxu0 %v4868_v48  ;;  %3452 = vmatprep.subr.mxu1 %v5384_v2 }
 0x29e   : > { %3463 = vmatprep.subr.mxu0 %v5384_v2  ;;  %3453 = vmatpush3.msra.mxu1 %v2238_v41 }
 0x29f   : > { %3464 = vmatpush3.msra.mxu0 %v4880_v55  ;;  %3455 = vmatmul.mubr.f32.vlgmr.msra.gmra.mxu1 %v4950_v33  ;;  %v2036_v55 = vstv %s2035_s14 }
 0x2a0   : > { %3465 = vmatprep.subr.mxu0 %v5384_v2  ;;  %3492 = vmatprep.subr.mxu1 %v5384_v2 }
 0x2a1   : > { %3466 = vmatpush3.msra.mxu0 %v4892_v3  ;;  %3493 = vmatpush3.msra.mxu1 %v4863_v24 }
 0x2a2   : > { %3467 = vmatprep.subr.mxu0 %v5384_v2  ;;  %3494 = vmatprep.subr.mxu1 %v5384_v2 }
 0x2a3   : > { %3468 = vmatpush3.msra.mxu0 %v4904_v11  ;;  %3495 = vmatpush3.msra.mxu1 %v4872_v36 }
 0x2a4   : > { %3469 = vmatprep.subr.mxu0 %v5384_v2  ;;  %3496 = vmatprep.subr.mxu1 %v5384_v2 }
 0x2a5   : > { %3470 = vmatpush3.msra.mxu0 %v4910_v23  ;;  %3497 = vmatpush3.msra.mxu1 %v4853_v46 }
 0x2a6   : > { %3471 = vmatprep.subr.mxu0 %v5384_v2  ;;  %3498 = vmatprep.subr.mxu1 %v5384_v2 }
 0x2a7   : > { %3472 = vmatpush3.msra.mxu0 %v4929_v38  ;;  %3499 = vmatpush3.msra.mxu1 %v4858_v32 }
 0x2a8   : > { %3473 = vmatprep.subr.mxu0 %v5384_v2  ;;  %3500 = vmatprep.subr.mxu1 %v5384_v2 }
 0x2a9   : > { %3474 = vmatpush3.msra.mxu0 %v4944_v15  ;;  %3501 = vmatpush3.msra.mxu1 %v4865_v42 }
 0x2aa   : > { %3475 = vmatprep.subr.mxu0 %v5384_v2  ;;  %3502 = vmatprep.subr.mxu1 %v5384_v2 }
 0x2ab   : > { %3476 = vmatpush3.msra.mxu0 %v4958_v34  ;;  %3503 = vmatpush3.msra.mxu1 %v4877_v5 }
 0x2ac   : > { %3477 = vmatprep.subr.mxu0 %v5384_v2  ;;  %3504 = vmatprep.subr.mxu1 %v5384_v2 }
 0x2ad   : > { %3478 = vmatpush3.msra.mxu0 %v4970_v4  ;;  %3505 = vmatpush3.msra.mxu1 %v4883_v39 }
 0x2ae   : > { %3479 = vmatprep.subr.mxu0 %v5384_v2  ;;  %3506 = vmatprep.subr.mxu1 %v5384_v2 }
 0x2af   : > { %3480 = vmatpush3.msra.mxu0 %v4985_v37  ;;  %3507 = vmatpush3.msra.mxu1 %v4895_v31 }
 0x2b0   : > { %3481 = vmatprep.subr.mxu0 %v5384_v2  ;;  %3508 = vmatprep.subr.mxu1 %v5384_v2 }
 0x2b1   : > { %3482 = vmatpush3.msra.mxu0 %v4997_v25  ;;  %3509 = vmatpush3.msra.mxu1 %v4907_v52 }
 0x2b2   : > { %3483 = vmatprep.subr.mxu0 %v5384_v2  ;;  %3510 = vmatprep.subr.mxu1 %v5384_v2 }
 0x2b3   : > { %3484 = vmatpush3.msra.mxu0 %v5010_v10  ;;  %3511 = vmatpush3.msra.mxu1 %v4921_v21 }
 0x2b4   : > { %3485 = vmatprep.subr.mxu0 %v5384_v2  ;;  %3512 = vmatprep.subr.mxu1 %v5384_v2 }
 0x2b5   : > { %3486 = vmatpush3.msra.mxu0 %v5020_v45  ;;  %3513 = vmatpush3.msra.mxu1 %v4936_v27 }
 0x2b6   : > { %3487 = vmatprep.subr.mxu0 %v5384_v2  ;;  %3514 = vmatprep.subr.mxu1 %v5384_v2 }
 0x2b7   : > { %3488 = vmatpush3.msra.mxu0 %v5033_v0  ;;  %3489 = vmatprep.mubr.msk.f32.mxu0 %vm3788_vm0, %v5384_v2 }
 0x2b8   : > { %3515 = vmatpush3.msra.mxu1 %v4948_v7  ;;  %3490 = vmatmul.mubr.f32.vlgmr.msra.gmra.mxu0 %v4977_v49 }
 0x2b9   : > { %3516 = vmatprep.subr.mxu1 %v5384_v2  ;;  %3527 = vmatprep.subr.mxu0 %v5384_v2 }
 0x2ba   : > { %3517 = vmatpush3.msra.mxu1 %v4962_v26  ;;  %3528 = vmatpush3.msra.mxu0 %v2131_v63 }
 0x2bb   : > { %3518 = vmatprep.subr.mxu1 %v5384_v2  ;;  %3529 = vmatprep.subr.mxu0 %v5384_v2 }
 0x2bc   : > { %3519 = vmatpush3.msra.mxu1 %v4974_v28  ;;  %3530 = vmatpush3.msra.mxu0 %v2138_v60 }
 0x2bd   : > { %3520 = vmatprep.subr.mxu1 %v5384_v2  ;;  %3531 = vmatprep.subr.mxu0 %v5384_v2 }
 0x2be   : > { %3521 = vmatpush3.msra.mxu1 %v4989_v18  ;;  %3532 = vmatpush3.msra.mxu0 %v2145_v13 }
 0x2bf   : > { %3522 = vmatprep.subr.mxu1 %v5384_v2  ;;  %3533 = vmatprep.subr.mxu0 %v5384_v2 }
 0x2c0   : > { %3523 = vmatpush3.msra.mxu1 %v5001_v6  ;;  %3524 = vmatprep.mubr.msk.f32.mxu1 %vm3788_vm0, %v5384_v2 }
 0x2c1   : > { %3534 = vmatpush3.msra.mxu0 %v2152_v59  ;;  %3525 = vmatmul.mubr.f32.vlgmr.msra.gmra.mxu1 %v2120_v30 }
 0x2c2   : > { %3535 = vmatprep.subr.mxu0 %v5384_v2  ;;  %3562 = vmatprep.subr.mxu1 %v5384_v2 }
 0x2c3   : > { %3536 = vmatpush3.msra.mxu0 %v2159_v50  ;;  %3563 = vmatpush3.msra.mxu1 %v4863_v24 }
 0x2c4   : > { %3537 = vmatprep.subr.mxu0 %v5384_v2  ;;  %3564 = vmatprep.subr.mxu1 %v5384_v2 }
 0x2c5   : > { %3538 = vmatpush3.msra.mxu0 %v2166_v56  ;;  %3565 = vmatpush3.msra.mxu1 %v4872_v36 }
 0x2c6   : > { %3539 = vmatprep.subr.mxu0 %v5384_v2  ;;  %3566 = vmatprep.subr.mxu1 %v5384_v2 }
 0x2c7   : > { %3540 = vmatpush3.msra.mxu0 %v2173_v19  ;;  %3567 = vmatpush3.msra.mxu1 %v4853_v46 }
 0x2c8   : > { %3541 = vmatprep.subr.mxu0 %v5384_v2  ;;  %3568 = vmatprep.subr.mxu1 %v5384_v2 }
 0x2c9   : > { %3542 = vmatpush3.msra.mxu0 %v2180_v58  ;;  %3569 = vmatpush3.msra.mxu1 %v4858_v32 }
 0x2ca   : > { %3543 = vmatprep.subr.mxu0 %v5384_v2  ;;  %3570 = vmatprep.subr.mxu1 %v5384_v2 }
 0x2cb   : > { %3544 = vmatpush3.msra.mxu0 %v2187_v22  ;;  %3571 = vmatpush3.msra.mxu1 %v4865_v42 }
 0x2cc   : > { %3545 = vmatprep.subr.mxu0 %v5384_v2  ;;  %3572 = vmatprep.subr.mxu1 %v5384_v2 }
 0x2cd   : > { %3546 = vmatpush3.msra.mxu0 %v2194_v62  ;;  %3573 = vmatpush3.msra.mxu1 %v4877_v5 }
 0x2ce   : > { %3547 = vmatprep.subr.mxu0 %v5384_v2  ;;  %3574 = vmatprep.subr.mxu1 %v5384_v2 }
 0x2cf   : > { %3548 = vmatpush3.msra.mxu0 %v2201_v40  ;;  %3575 = vmatpush3.msra.mxu1 %v4883_v39 }
 0x2d0   : > { %3549 = vmatprep.subr.mxu0 %v5384_v2  ;;  %3576 = vmatprep.subr.mxu1 %v5384_v2 }
 0x2d1   : > { %3550 = vmatpush3.msra.mxu0 %v2208_v43  ;;  %3577 = vmatpush3.msra.mxu1 %v4895_v31 }
 0x2d2   : > { %3551 = vmatprep.subr.mxu0 %v5384_v2  ;;  %3578 = vmatprep.subr.mxu1 %v5384_v2 }
 0x2d3   : > { %3552 = vmatpush3.msra.mxu0 %v2215_v14  ;;  %3579 = vmatpush3.msra.mxu1 %v4907_v52 }
 0x2d4   : > { %3553 = vmatprep.subr.mxu0 %v5384_v2  ;;  %3580 = vmatprep.subr.mxu1 %v5384_v2 }
 0x2d5   : > { %3554 = vmatpush3.msra.mxu0 %v2222_v51  ;;  %3581 = vmatpush3.msra.mxu1 %v4921_v21 }
 0x2d6   : > { %3555 = vmatprep.subr.mxu0 %v5384_v2  ;;  %3582 = vmatprep.subr.mxu1 %v5384_v2 }
 0x2d7   : > { %3556 = vmatpush3.msra.mxu0 %v2229_v29  ;;  %3583 = vmatpush3.msra.mxu1 %v4936_v27 }
 0x2d8   : > { %3557 = vmatprep.subr.mxu0 %v5384_v2  ;;  %3584 = vmatprep.subr.mxu1 %v5384_v2 }
 0x2d9   : > { %3558 = vmatpush3.msra.mxu0 %v2236_v17  ;;  %3559 = vmatprep.mubr.msk.f32.mxu0 %vm3788_vm0, %v5384_v2 }
 0x2da   : > { %3585 = vmatpush3.msra.mxu1 %v4948_v7  ;;  %3560 = vmatmul.mubr.f32.vlgmr.msra.gmra.mxu0 %v4950_v33 }
 0x2db   : > { %3586 = vmatprep.subr.mxu1 %v5384_v2  ;;  %3594 = vmatprep.mubr.msk.f32.mxu1 %vm3788_vm0, %v5384_v2 }
 0x2dc   : > { %3587 = vmatpush3.msra.mxu1 %v4962_v26 }
 0x2dd   : > { %3588 = vmatprep.subr.mxu1 %v5384_v2 }
 0x2de   : > { %3589 = vmatpush3.msra.mxu1 %v4974_v28 }
 0x2df   : > { %3590 = vmatprep.subr.mxu1 %v5384_v2 }
 0x2e0   : > { %3591 = vmatpush3.msra.mxu1 %v4989_v18 }
 0x2e1   : > { %3592 = vmatprep.subr.mxu1 %v5384_v2 }
 0x2e2   : > { %3593 = vmatpush3.msra.mxu1 %v5001_v6 }
 0x2e3   : > { %3595 = vmatmul.mubr.f32.vlgmr.msra.gmra.mxu1 %v4950_v33 }
 0x358   : > { %v2124_v46 = vpop.f32.mrf.mxu0 }
 0x359   : > { %v2125_v39 = vadd.f32 %v2124_v46, %v2036_v55 }
 0x35a   : > { %v3421_v32 = vpop.f32.mrf.mxu0 }
 0x35f   : > { %v2275_v24 = vpop.f32.mrf.mxu1 }
 0x360   : > { %v2276_v9 = vadd.f32 %v2275_v24, %v2125_v39 }
 0x361   : > { %v3456_v42 = vpop.f32.mrf.mxu1 }
 0x378   : > { %v2379_v48 = vpop.f32.mrf.mxu0 }
 0x379   : > { %v2380_v13 = vadd.f32 %v2379_v48, %v2276_v9 }
 0x37a   : > { %v3491_v36 = vpop.f32.mrf.mxu0 }
 0x381   : > { %v2468_v47 = vpop.f32.mrf.mxu1 }
 0x382   : > { %v2469_v3 = vadd.f32 %v2468_v47, %v2380_v13 }
 0x383   : > { %v3526_v5 = vpop.f32.mrf.mxu1 }
 0x39a   : > { %v2587_v63 = vpop.f32.mrf.mxu0 }
 0x39b   : > { %v2588_v31 = vadd.f32 %v2587_v63, %v2469_v3 }
 0x39c   : > { %v3561_v2 = vpop.f32.mrf.mxu0 }
 0x3a3   : > { %v2674_v60 = vpop.f32.mrf.mxu1 }
 0x3a4   : > { %v2675_v59 = vadd.f32 %v2674_v60, %v2588_v31 }
 0x3a5   : > { %v3596_v11 = vpop.f32.mrf.mxu1 }
 0x3a6   : > { %2678 = vst [vmem:[%s269_s17] sm:$0x1] %v2675_v59 }
 0x3a7   : > { %3736 = shalt.err (!%p3733_p3)
}
 0x3a8   : > { %s3737_s30 = scalar_lea.hbm %s5225_s21, 16  ;;  %s3741_s14 = scalar_lea.hbm %s5267_s7, 32 }
 0x3a9   : > { %p3738_p4 = scmp.ne.s32.totalorder %s5225_s21, %s3737_s30  ;;  %p3742_p9 = scmp.lt.s32.totalorder %s5225_s21, %s5267_s7 }
 0x3aa   : > { %p3743_p10 = scmp.lt.s32.totalorder %s3741_s14, %s3737_s30 }
 0x3ab   : > { %p3739_p7 = pnand %p3738_p4, %p3871_p5 }
 0x3ac   : > { %p3744_p11 = por %p3743_p10, %p3742_p9 }
 0x3ad   : > { %p3740_p8 = pneg %p3739_p7 }
 0x3af   : > { %p3745_p12 = pnand %p3744_p11, %p3740_p8 }
 0x3b1   : > { %3748 = shalt.err (!%p3745_p12)
}
 0x3b2   : > { %3597 = dma.vmem_to_hbm [thread:$0]  (%p3871_p5), %s2693_s18, 16, %s5225_s21, %s2680_s22  }
 0x3b3 PF: > { %p3603_p13 = scmp.ge.s32.totalorder %s3783_s29, 2  ;;  %s2704_s17 = sand.u32 1, %s3771_s26  }
 0x3b4   : > { %s2705_s19 = scalar_lea.sflag [#allocation4], %s2704_s17 }
 0x3b5   : > { %p3600_p0 = pnand %p3603_p13, %p3875_p6 }
 0x3b7   : > { %p3601_p1 = pneg %p3600_p0 }
 0x3b9   : > { %3766 = dma.done.wait (%p3601_p1), %s2705_s19, 16  }
 0x3ba   : > { %3768 = vsyncadd (%p3601_p1), %s2705_s19, 4294967280  ;;  %p18_p2 = scmp.ge.s32.totalorder %s3858_s8, 4   ;;  %s5385_s26 = smov %s3775_s27 }
 0x3bb   : > { %s5386_s27 = smov %s3779_s28  ;;  %s5387_s28 = smov %s3869_s11 }
 0x3bc   : > { %s5388_s29 = smov %s3858_s8  ;;  %20 = sbr.rel (!%p18_p2) target bundleno = 5 (0x5), region = 83 }
 0x3c1   :  { %2709 = vsyncpa [#allocation4], 1 }
 0x3c2   :  { %2711 = vsyncpa [#allocation4 + $0x1], 1 }

</bundles_post_ra>
